<compile_context>
chip_gen: v5e
topology: v5e:2x2
jax: 0.10.0
libtpu: 0.0.40
codegen_flags: <defaults>
</compile_context>

<pallas_src>
import jax
import jax.numpy as jnp
from jax.experimental import pallas as pl
from jax.experimental.pallas import tpu as pltpu


def addon_host_kernel(x_ref, w_ref, b_ref, a_ref, bmat_ref,
                      o_ref, acc_ref, low_ref):
    j = pl.program_id(1)          # Dout-tile index
    k = pl.program_id(2)          # Din-reduction index (innermost)

    @pl.when(k == 0)
    def _init_acc():
        acc_ref[...] = jnp.zeros_like(acc_ref)

    # low_ref carries (x' @ A) for the current i tile across the whole j loop,
    # so it is zeroed only at (j == 0, k == 0).
    @pl.when((j == 0) & (k == 0))
    def _init_low():
        low_ref[...] = jnp.zeros_like(low_ref)

    x = x_ref[...]

    # --- host Linear (pre-forward gamma already folded into W) ------------
    acc_ref[...] += jnp.dot(x, w_ref[...], preferred_element_type=jnp.float32)

    # --- adapter down-projection: depends only on (i, k); do it once per
    #     (i, k) at j == 0 and reuse for every other j tile. A is resident in
    #     VMEM (constant block index), sliced along the sublane dim here.
    @pl.when(j == 0)
    def _down_proj():
        tk = x_ref.shape[1]
        k_off = pl.multiple_of(k * tk, tk)
        a_blk = a_ref[pl.ds(k_off, tk), :]
        low_ref[...] += jnp.dot(x, a_blk, preferred_element_type=jnp.float32)

    # --- post-forward addon epilogue: once per (i, j) output tile ----------
    @pl.when(k == pl.num_programs(2) - 1)
    def _finalize():
        # Keep the up-projection LHS in f32 (don't truncate the accumulation);
        # this (tm, R) x (R, tn) matmul is tiny vs. the host matmul.
        lora = jnp.dot(low_ref[...], bmat_ref[...].astype(jnp.float32),
                       preferred_element_type=jnp.float32)
        out = acc_ref[...] + b_ref[...].astype(jnp.float32) + lora
        o_ref[...] = out.astype(o_ref.dtype)


def addon_host_forward(x, gamma, w, b, a_mat, b_mat, *, tm=512, tn=512, tk=512):
    """Fused forward of the addon-host: y = (x*gamma)@W + b + ((x*gamma)@A)@B.

    For best MXU utilisation feed bf16 operands for x/W/A/B (f32 accumulation
    is done in kernel scratch); gamma and b may stay f32.  Default 512 tiles
    target realistic shapes; on v5e tn=256 keeps the store epilogue lean.
    """
    S, Din = x.shape
    Dout = w.shape[1]
    R = a_mat.shape[1]

    # Pre-forward addon folded into the (static) weights:
    #   (x*gamma) @ W == x @ (diag(gamma) @ W), same for A.
    g = gamma.reshape(Din, 1).astype(jnp.float32)
    w_eff = (w.astype(jnp.float32) * g).astype(w.dtype)
    a_eff = (a_mat.astype(jnp.float32) * g).astype(a_mat.dtype)

    tm = min(tm, S)
    tn = min(tn, Dout)
    tk = min(tk, Din)
    assert S % tm == 0 and Dout % tn == 0 and Din % tk == 0, \
        "S/Dout/Din must be divisible by the (clamped) tile sizes"

    grid = (S // tm, Dout // tn, Din // tk)

    # FLOPs now match what the kernel actually executes (down-projection is no
    # longer recomputed per j tile).
    flops = 2 * S * Din * Dout + 2 * S * Din * R + 2 * S * R * Dout
    bytes_accessed = (sum(int(t.size) * t.dtype.itemsize
                          for t in (x, w_eff, b, a_eff, b_mat))
                      + S * Dout * x.dtype.itemsize)

    return pl.pallas_call(
        addon_host_kernel,
        out_shape=jax.ShapeDtypeStruct((S, Dout), x.dtype),
        grid_spec=pltpu.PrefetchScalarGridSpec(
            num_scalar_prefetch=0,
            grid=grid,
            in_specs=[
                pl.BlockSpec((tm, tk), lambda i, j, k: (i, k)),   # x        (i, k)
                pl.BlockSpec((tk, tn), lambda i, j, k: (k, j)),   # W'       (k, j)
                pl.BlockSpec((1, tn),  lambda i, j, k: (0, j)),   # bias     (-, j) re-DMA only on j change
                pl.BlockSpec((Din, R), lambda i, j, k: (0, 0)),   # A'       fully resident (DMA'd once)
                pl.BlockSpec((R, tn),  lambda i, j, k: (0, j)),   # B        (-, j)
            ],
            out_specs=pl.BlockSpec((tm, tn), lambda i, j, k: (i, j)),
            scratch_shapes=[
                pltpu.VMEM((tm, tn), jnp.float32),   # host-path f32 accumulator
                pltpu.VMEM((tm, R), jnp.float32),    # (x' @ A) f32 accumulator, carried across j
            ],
        ),
        compiler_params=pltpu.CompilerParams(
            # j carries the low_ref accumulator across Dout tiles -> it must NOT
            # be megacore-sharded; only the i axis is parallel (keep S/tm >= 2
            # so both v7x TensorCores get work).
            dimension_semantics=("parallel", "arbitrary", "arbitrary"),
            vmem_limit_bytes=48 * 1024 * 1024,
        ),
        cost_estimate=pl.CostEstimate(
            flops=flops, transcendentals=0, bytes_accessed=bytes_accessed),
    )(x, w_eff, b, a_eff, b_mat)


if __name__ == "__main__":
    # Small but MXU/lane-aligned shapes (feature dims are 128-multiples so
    # stores are unmasked and MXU tiles are full; adapter rank padded to 128).
    S, Din, Dout, R = 256, 512, 512, 128

    key = jax.random.PRNGKey(0)
    kx, kg, kw, kb, ka, kbm = jax.random.split(key, 6)

    x = jax.random.normal(kx, (S, Din), dtype=jnp.float32)
    gamma = 1.0 + 0.1 * jax.random.normal(kg, (1, Din), dtype=jnp.float32)
    w = jax.random.normal(kw, (Din, Dout), dtype=jnp.float32) * (Din ** -0.5)
    b = jax.random.normal(kb, (1, Dout), dtype=jnp.float32) * 0.01
    a_mat = jax.random.normal(ka, (Din, R), dtype=jnp.float32) * (Din ** -0.5)
    b_mat = jax.random.normal(kbm, (R, Dout), dtype=jnp.float32) * (R ** -0.5)

    # Pure-JAX reference of the same addon-host forward (full f32 matmuls).
    hp = jax.lax.Precision.HIGHEST
    xs_ref = x * gamma
    y_ref = (jnp.dot(xs_ref, w, precision=hp) + b
             + jnp.dot(jnp.dot(xs_ref, a_mat, precision=hp), b_mat, precision=hp))

    # Demo-only small tiles so this tiny problem still exercises a (2, 2, 2)
    # grid (j-carry of the down-projection, k-reduction, and >=2 parallel
    # i tiles for v7x megacore).  Realistic shapes should use the defaults.
    tiles = dict(tm=128, tn=256, tk=256)

    # --- f32 operand path (correctness/debug path) ---
    y_f32 = jax.block_until_ready(
        addon_host_forward(x, gamma, w, b, a_mat, b_mat, **tiles))
    assert y_f32.shape == (S, Dout)
    assert jnp.allclose(y_f32, y_ref, atol=1e-3, rtol=1e-3)

    # --- bf16 operand path (preferred on v5e/v6e/v7x: bf16 MXU inputs,
    #     f32 accumulation; gamma and bias stay f32) ---
    y_bf16 = jax.block_until_ready(
        addon_host_forward(x.astype(jnp.bfloat16), gamma,
                           w.astype(jnp.bfloat16), b,
                           a_mat.astype(jnp.bfloat16), b_mat.astype(jnp.bfloat16),
                           **tiles))
    assert jnp.allclose(y_bf16.astype(jnp.float32), y_ref, atol=1e-1, rtol=1e-1)

    print("KERNEL_OK")
</pallas_src>

<mosaic_0001>
module attributes {stable_mosaic.version = 11 : i64} {
  func.func @addon_host_kernel(%arg0: i32, %arg1: i32, %arg2: i32, %arg3: memref<128x256xf32, #tpu.memory_space<vmem>>, %arg4: memref<256x256xf32, #tpu.memory_space<vmem>>, %arg5: memref<1x256xf32, #tpu.memory_space<vmem>>, %arg6: memref<512x128xf32, #tpu.memory_space<vmem>>, %arg7: memref<128x256xf32, #tpu.memory_space<vmem>>, %arg8: memref<128x256xf32, #tpu.memory_space<vmem>>, %arg9: memref<128x256xf32, #tpu.memory_space<vmem>>, %arg10: memref<128x128xf32, #tpu.memory_space<vmem>>) attributes {dimension_semantics = [#tpu.dimension_semantics<parallel>, #tpu.dimension_semantics<arbitrary>, #tpu.dimension_semantics<arbitrary>], iteration_bounds = array<i64: 2, 2, 2>, scalar_prefetch = 0 : i64, scratch_operands = 2 : i64, tpu.core_type = #tpu.core_type<tc>, window_params = [{transform_indices = @transform_0, window_bounds = array<i64: 128, 256>}, {transform_indices = @transform_1, window_bounds = array<i64: 256, 256>}, {transform_indices = @transform_2, window_bounds = array<i64: 1, 256>}, {pipeline_mode = #tpu.pipeline_mode<synchronous>, transform_indices = @transform_3, window_bounds = array<i64: 512, 128>}, {transform_indices = @transform_4, window_bounds = array<i64: 128, 256>}, {transform_indices = @transform_5, window_bounds = array<i64: 128, 256>}]} {
    %c0_i32 = arith.constant 0 : i32
    %0 = arith.cmpi eq, %arg2, %c0_i32 : i32
    %1 = arith.extui %0 : i1 to i32
    %c0_i32_0 = arith.constant 0 : i32
    %2 = arith.cmpi ne, %1, %c0_i32_0 : i32
    scf.if %2 {
      %cst_14 = arith.constant 0.000000e+00 : f32
      %20 = vector.broadcast %cst_14 : f32 to vector<128x256xf32>
      %c0_15 = arith.constant 0 : index
      %c0_16 = arith.constant 0 : index
      %21 = vector.load %arg9[%c0_15, %c0_16] : memref<128x256xf32, #tpu.memory_space<vmem>>, vector<128x256xf32>
      tpu.vector_store %arg9[%c0_15, %c0_16], %20 {strides = array<i32>} : memref<128x256xf32, #tpu.memory_space<vmem>>, vector<128x256xf32>,
    } else {
    }
    %c0_i32_1 = arith.constant 0 : i32
    %3 = arith.cmpi eq, %arg1, %c0_i32_1 : i32
    %c0_i32_2 = arith.constant 0 : i32
    %4 = arith.cmpi eq, %arg2, %c0_i32_2 : i32
    %5 = arith.andi %3, %4 : i1
    %6 = arith.extui %5 : i1 to i32
    %c0_i32_3 = arith.constant 0 : i32
    %7 = arith.cmpi ne, %6, %c0_i32_3 : i32
    scf.if %7 {
      %cst_14 = arith.constant 0.000000e+00 : f32
      %20 = vector.broadcast %cst_14 : f32 to vector<128x128xf32>
      %c0_15 = arith.constant 0 : index
      %c0_16 = arith.constant 0 : index
      %21 = vector.load %arg10[%c0_15, %c0_16] : memref<128x128xf32, #tpu.memory_space<vmem>>, vector<128x128xf32>
      tpu.vector_store %arg10[%c0_15, %c0_16], %20 {strides = array<i32>} : memref<128x128xf32, #tpu.memory_space<vmem>>, vector<128x128xf32>,
    } else {
    }
    %c0 = arith.constant 0 : index
    %c0_4 = arith.constant 0 : index
    %8 = vector.load %arg3[%c0, %c0_4] : memref<128x256xf32, #tpu.memory_space<vmem>>, vector<128x256xf32>
    %c0_5 = arith.constant 0 : index
    %c0_6 = arith.constant 0 : index
    %9 = vector.load %arg9[%c0_5, %c0_6] : memref<128x256xf32, #tpu.memory_space<vmem>>, vector<128x256xf32>
    %c0_7 = arith.constant 0 : index
    %c0_8 = arith.constant 0 : index
    %10 = vector.load %arg4[%c0_7, %c0_8] : memref<256x256xf32, #tpu.memory_space<vmem>>, vector<256x256xf32>
    %cst = arith.constant dense<0.000000e+00> : vector<128x256xf32>
    %11 = tpu.matmul %8, %10, %cst {dimension_numbers = #tpu.dot_dimension_numbers<[1], [0], [0], [1], [0, 0, 1, 1], [], []>} : vector<128x256xf32>, vector<256x256xf32>, vector<128x256xf32> -> vector<128x256xf32>
    %12 = arith.addf %9, %11 : vector<128x256xf32>
    %c0_9 = arith.constant 0 : index
    %c0_10 = arith.constant 0 : index
    %13 = vector.load %arg9[%c0_9, %c0_10] : memref<128x256xf32, #tpu.memory_space<vmem>>, vector<128x256xf32>
    tpu.vector_store %arg9[%c0_9, %c0_10], %12 {strides = array<i32>} : memref<128x256xf32, #tpu.memory_space<vmem>>, vector<128x256xf32>,
    %c0_i32_11 = arith.constant 0 : i32
    %14 = arith.cmpi eq, %arg1, %c0_i32_11 : i32
    %15 = arith.extui %14 : i1 to i32
    %c0_i32_12 = arith.constant 0 : i32
    %16 = arith.cmpi ne, %15, %c0_i32_12 : i32
    scf.if %16 {
      %c256_i32 = arith.constant 256 : i32
      %20 = arith.muli %arg2, %c256_i32 : i32
      %21 = tpu.assume_multiple %20, 256 : i32
      %22 = arith.index_cast %21 : i32 to index
      %c0_14 = arith.constant 0 : index
      %23 = vector.load %arg6[%22, %c0_14] : memref<512x128xf32, #tpu.memory_space<vmem>>, vector<256x128xf32>
      %c0_15 = arith.constant 0 : index
      %c0_16 = arith.constant 0 : index
      %24 = vector.load %arg10[%c0_15, %c0_16] : memref<128x128xf32, #tpu.memory_space<vmem>>, vector<128x128xf32>
      %cst_17 = arith.constant dense<0.000000e+00> : vector<128x128xf32>
      %25 = tpu.matmul %8, %23, %cst_17 {dimension_numbers = #tpu.dot_dimension_numbers<[1], [0], [0], [1], [0, 0, 1, 1], [], []>} : vector<128x256xf32>, vector<256x128xf32>, vector<128x128xf32> -> vector<128x128xf32>
      %26 = arith.addf %24, %25 : vector<128x128xf32>
      %c0_18 = arith.constant 0 : index
      %c0_19 = arith.constant 0 : index
      %27 = vector.load %arg10[%c0_18, %c0_19] : memref<128x128xf32, #tpu.memory_space<vmem>>, vector<128x128xf32>
      tpu.vector_store %arg10[%c0_18, %c0_19], %26 {strides = array<i32>} : memref<128x128xf32, #tpu.memory_space<vmem>>, vector<128x128xf32>,
    } else {
    }
    %c1_i32 = arith.constant 1 : i32
    %17 = arith.cmpi eq, %arg2, %c1_i32 : i32
    %18 = arith.extui %17 : i1 to i32
    %c0_i32_13 = arith.constant 0 : i32
    %19 = arith.cmpi ne, %18, %c0_i32_13 : i32
    scf.if %19 {
      %c0_14 = arith.constant 0 : index
      %c0_15 = arith.constant 0 : index
      %20 = vector.load %arg10[%c0_14, %c0_15] : memref<128x128xf32, #tpu.memory_space<vmem>>, vector<128x128xf32>
      %c0_16 = arith.constant 0 : index
      %c0_17 = arith.constant 0 : index
      %21 = vector.load %arg7[%c0_16, %c0_17] : memref<128x256xf32, #tpu.memory_space<vmem>>, vector<128x256xf32>
      %cst_18 = arith.constant dense<0.000000e+00> : vector<128x256xf32>
      %22 = tpu.matmul %20, %21, %cst_18 {dimension_numbers = #tpu.dot_dimension_numbers<[1], [0], [0], [1], [0, 0, 1, 1], [], []>} : vector<128x128xf32>, vector<128x256xf32>, vector<128x256xf32> -> vector<128x256xf32>
      %c0_19 = arith.constant 0 : index
      %c0_20 = arith.constant 0 : index
      %23 = vector.load %arg9[%c0_19, %c0_20] : memref<128x256xf32, #tpu.memory_space<vmem>>, vector<128x256xf32>
      %c0_21 = arith.constant 0 : index
      %c0_22 = arith.constant 0 : index
      %24 = vector.load %arg5[%c0_21, %c0_22] : memref<1x256xf32, #tpu.memory_space<vmem>>, vector<1x256xf32>
      %25 = vector.broadcast %24 : vector<1x256xf32> to vector<128x256xf32>
      %26 = arith.addf %23, %25 : vector<128x256xf32>
      %27 = arith.addf %26, %22 : vector<128x256xf32>
      %c0_23 = arith.constant 0 : index
      %c0_24 = arith.constant 0 : index
      %28 = vector.load %arg8[%c0_23, %c0_24] : memref<128x256xf32, #tpu.memory_space<vmem>>, vector<128x256xf32>
      tpu.vector_store %arg8[%c0_23, %c0_24], %27 {strides = array<i32>} : memref<128x256xf32, #tpu.memory_space<vmem>>, vector<128x256xf32>,
    } else {
    }
    return
  }
  func.func @transform_0(%arg0: i32, %arg1: i32, %arg2: i32) -> (i32, i32) {
    %c0_i32 = arith.constant 0 : i32
    return %arg0, %arg2 : i32, i32
  }
  func.func @transform_1(%arg0: i32, %arg1: i32, %arg2: i32) -> (i32, i32) {
    %c0_i32 = arith.constant 0 : i32
    return %arg2, %arg1 : i32, i32
  }
  func.func @transform_2(%arg0: i32, %arg1: i32, %arg2: i32) -> (i32, i32) {
    %c0_i32 = arith.constant 0 : i32
    %c0_i32_0 = arith.constant 0 : i32
    return %c0_i32, %arg1 : i32, i32
  }
  func.func @transform_3(%arg0: i32, %arg1: i32, %arg2: i32) -> (i32, i32) {
    %c0_i32 = arith.constant 0 : i32
    %c0_i32_0 = arith.constant 0 : i32
    %c0_i32_1 = arith.constant 0 : i32
    return %c0_i32, %c0_i32_0 : i32, i32
  }
  func.func @transform_4(%arg0: i32, %arg1: i32, %arg2: i32) -> (i32, i32) {
    %c0_i32 = arith.constant 0 : i32
    %c0_i32_0 = arith.constant 0 : i32
    return %c0_i32, %arg1 : i32, i32
  }
  func.func @transform_5(%arg0: i32, %arg1: i32, %arg2: i32) -> (i32, i32) {
    %c0_i32 = arith.constant 0 : i32
    return %arg0, %arg1 : i32, i32
  }
}

</mosaic_0001>

<bundles_post_ra>
// kernel: tpu_custom_call.1
= control target key start
LH: loop header
LB: loop body
LE: loop exit
PB: predicated region body
PF: predicated region fallthrough
CT: control target
= control target key end

     0   :  { %s3167_s0 = inlined_call_operand.hbm [shape: f32[256,512], index: 0, kind: input, shape index: {}]   ;;  %s3168_s1 = inlined_call_operand.hbm [shape: f32[512,512], index: 1, kind: input, shape index: {}]   ;;  %s3169_s2 = inlined_call_operand.hbm [shape: f32[1,512], index: 2, kind: input, shape index: {}]   ;;  %s3170_s3 = inlined_call_operand.hbm [shape: f32[512,128], index: 3, kind: input, shape index: {}]   ;;  %s3171_s4 = inlined_call_operand.hbm [shape: f32[128,512], index: 4, kind: input, shape index: {}]   ;;  %s3172_s5 = inlined_call_operand.hbm [shape: f32[256,512], index: 5, kind: output, shape index: {}]  }
   0x1   :  { %3201 = sst [smem:[#allocation42_spill]] %s3167_s0 }
   0x2   :  { %3202 = sst [smem:[#allocation43_spill]] %s3168_s1 }
   0x3   :  { %3203 = sst [smem:[#allocation44_spill]] %s3169_s2 }
   0x4   :  { %3204 = sst [smem:[#allocation45_spill]] %s3170_s3 }
   0x5   :  { %3205 = sst [smem:[#allocation46_spill]] %s3171_s4 }
   0x6   :  { %3206 = sst [smem:[#allocation47_spill]] %s3172_s5 }
   0x7   :  { %10 = vsyncpa [#allocation5], 0 }
   0x8   :  { %12 = vsyncpa [#allocation5 + $0x1], 0 }
   0x9   :  { %13 = vsyncpa [#allocation8], 0 }
   0xa   :  { %15 = vsyncpa [#allocation8 + $0x1], 0 }
   0xb   :  { %16 = vsyncpa [#allocation11], 0 }
   0xc   :  { %17 = vsyncpa [#allocation6], 0 }
   0xd   :  { %19 = vsyncpa [#allocation6 + $0x1], 0  ;;  %s2354_s18 = smov 0   ;;  %s2356_s19 = smov 0  }
   0xe   :  { %s2358_s20 = smov 0   ;;  %s2360_s21 = smov 0  }
   0xf   :  { %s2362_s22 = smov 0   ;;  %s2364_s23 = smov 0  }
  0x10   :  { %s2366_s24 = smov 0   ;;  %s2368_s25 = smov 0  }
  0x11   :  { %s2370_s26 = smov 0   ;;  %s2372_s27 = smov 0  }
  0x12   :  { %s2374_s28 = smov 0   ;;  %s2376_s29 = smov 0  }
  0x13   :  { %s2378_s30 = smov 0   ;;  %s2380_s6 = smov 0  }
  0x14   :  { %s2382_s7 = smov 0   ;;  %s2384_s8 = smov 0  }
  0x15   :  { %s2386_s9 = smov 0   ;;  %s2388_s10 = smov 0  }
  0x16   :  { %s2390_s11 = smov 0  }
  0x17 LB: > { %3207 = sst [smem:[#allocation20_spill]] %s2239_s18  ;;  %s37_s12 = sadd.s32 1, %s2299_s8  ;;  %s2311_s11 = sphi %s2390_s11, %s25_s11   ;;  %s2307_s10 = sphi %s2388_s10, %s3286_s10   ;;  %s2303_s9 = sphi %s2386_s9, %s3293_s9   ;;  %s2299_s8 = sphi %s2384_s8, %s3292_s8   ;;  %s2295_s7 = sphi %s2382_s7, %s3283_s7   ;;  %s2291_s6 = sphi %s2380_s6, %s3291_s6   ;;  %s2287_s30 = sphi %s2378_s30, %s3282_s30   ;;  %s2283_s29 = sphi %s2376_s29, %s3281_s29   ;;  %s2279_s28 = sphi %s2374_s28, %s3290_s28   ;;  %s2275_s27 = sphi %s2372_s27, %s3289_s27   ;;  %s2271_s26 = sphi %s2370_s26, %s3279_s26   ;;  %s2267_s25 = sphi %s2368_s25, %s3288_s25   ;;  %s2263_s24 = sphi %s2366_s24, %s3287_s24   ;;  %s2259_s23 = sphi %s2364_s23, %s3277_s23   ;;  %s2255_s22 = sphi %s2362_s22, %s3276_s22   ;;  %s2251_s21 = sphi %s2360_s21, %s3275_s21   ;;  %s2247_s20 = sphi %s2358_s20, %s3274_s20   ;;  %s2243_s19 = sphi %s2356_s19, %s3273_s19   ;;  %s2239_s18 = sphi %s2354_s18, %s3272_s18  }
  0x18   : > { %3208 = sst [smem:[#allocation21_spill]] %s2243_s19  ;;  %p2451_p0 = scmp.ge.s32.totalorder %s37_s12, 2 }
  0x19   : > { %3209 = sst [smem:[#allocation22_spill]] %s2247_s20  ;;  %p60_p1 = scmp.ne.s32.totalorder %s2283_s29, %s2279_s28 }
  0x1a   : > { %3210 = sst [smem:[#allocation23_spill]] %s2251_s21  ;;  %p61_p2 = scmp.eq.s32.totalorder %s2311_s11, 0 }
  0x1b   : > { %3211 = sst [smem:[#allocation24_spill]] %s2255_s22  ;;  %s3295_s12 = smov (%p2451_p0, %s37_s12), 0 }
  0x1c   : > { %3212 = sst [smem:[#allocation25_spill]] %s2259_s23  ;;  %p2465_p3 = por %p61_p2, %p60_p1 }
  0x1d   : > { %3213 = sst [smem:[#allocation26_spill]] %s2271_s26  ;;  %p66_p4 = scmp.ne.s32.totalorder %s2279_s28, %s2275_s27 }
  0x1e   : > { %3214 = sst [smem:[#allocation27_spill]] %s2283_s29  ;;  %s2473_s17 = ssub.s32 %s2299_s8, %s3295_s12 }
  0x1f   : > { %3215 = sst [smem:[#allocation28_spill]] %s2287_s30  ;;  %p3191_p5 = scmp.lt.s32.totalorder %s2311_s11, 8 }
  0x20   : > { %3216 = sst [smem:[#allocation29_spill]] %s2291_s6  ;;  %s3182_s13 = sand.u32 1, %s2311_s11  }
  0x21   : > { %3217 = sst [smem:[#allocation30_spill]] %s2295_s7  ;;  %s235_s15 = sand.u32 1, %s2283_s29  }
  0x22   : > { %3218 = sst [smem:[#allocation31_spill]] %s2299_s8  ;;  %s1656_s5 = sshll.u32 %s235_s15, 8 }
  0x23   : > { %3219 = sst [smem:[#allocation32_spill]] %s2307_s10  ;;  %s1658_s7 = sshll.u32 %s2299_s8, 1 }
  0x24   : > { %3221 = sst [smem:[#allocation33_spill]] %s3295_s12  ;;  %s1689_s6 = sshll.u32 %s2307_s10, 6 }
  0x25   : > { %s243_s30 = sadd.s32 %s1689_s6, %s1658_s7  ;;  %s237_s4 = scalar_lea.vmem [#allocation4], %s1656_s5 }
  0x26   : > { %s248_s2 = sshll.u32 %s237_s4, 4  ;;  %s1660_s12 = sshll.u32 %s243_s30, 3  ;;  %s249_s2 = int_to_ptr.vmem [resolvable:$true] %s248_s2 }
  0x27   : > { %s3223_s0 = sld [smem:[#allocation42_spill]]  ;;  %p1776_p6 = pnand %p3191_p5, %p2465_p3 }
  0x28   : > { %s2489_s4 = scalar_lea.sflag [#allocation5], %s3182_s13  ;;  %s3176_s5 = smov 512  }
  0x29   : > { %3224 = sst [smem:[#allocation34_spill]] %s2489_s4  ;;  %s3178_s30 = smov 256  }
  0x2a   : > { %s3180_s3 = smov 16   ;;  %s40_s21 = sadd.s32 1, %s2303_s9 }
  0x2b   : > { %s81_s7 = sadd.s32 1, %s2271_s26  ;;  %s3297_s21 = smov (!%p2451_p0, %s40_s21), %s2303_s9 }
  0x2c   : > { %p88_p7 = scmp.ne.s32.totalorder %s2271_s26, %s2267_s25  ;;  %p94_p8 = scmp.ne.s32.totalorder %s2267_s25, %s2263_s24 }
  0x2d   : > { %s245_s15 = scalar_lea.hbm %s3223_s0, %s1660_s12  ;;  %p42_p9 = scmp.ge.s32.totalorder %s3297_s21, 2 }
  0x2e   : > { %s246_s6 = sshll.u32 %s245_s15, 4  ;;  %s182_s12 = sadd.s32 1, %s2247_s20  ;;  %s247_s6 = int_to_ptr.hbm [resolvable:$true] %s246_s6 }
  0x2f   : > { %1778 = dma.hbm_to_vmem [thread:$0]  (!%p1776_p6), %s247_s6, 4096, %s249_s2, %s2489_s4, %s3176_s5, %s3178_s30, %s3180_s3  }
  0x30   : > { %p2507_p10 = por %p88_p7, %p61_p2  ;;  %s3299_s21 = smov (%p42_p9, %s3297_s21), 0 }
  0x31   : > { %3226 = sst [smem:[#allocation35_spill]] %s3299_s21  ;;  %s3227_s2 = sadd.s32 1, %s2307_s10 }
  0x32   : > { %s3301_s2 = smov (!%p42_p9, %s3227_s2), %s2307_s10  ;;  %s2518_s14 = ssub.s32 %s2303_s9, %s3299_s21 }
  0x33   : > { %s260_s15 = sand.u32 1, %s2271_s26   ;;  %p46_p11 = scmp.ge.s32.totalorder %s3301_s2, 2 }
  0x34   : > { %s78_s6 = sor.u32 %s2518_s14, %s2473_s17  ;;  %s1661_s5 = sshll.u32 %s260_s15, 9 }
  0x35   : > { %p79_p12 = scmp.eq.s32.totalorder %s78_s6, 0  ;;  %s3303_s2 = smov (%p46_p11, %s3301_s2), 0 }
  0x36   : > { %3228 = sst [smem:[#allocation36_spill]] %s3303_s2  ;;  %s48_s3 = ssub.s32 %s2307_s10, %s3303_s2 }
  0x37   : > { %s2526_s30 = scalar_select %p79_p12, %s2271_s26, %s81_s7  }
  0x38   : > { %s50_s13 = sor.u32 %s2473_s17, %s48_s3  ;;  %s179_s0 = sor.u32 %s2518_s14, %s48_s3 }
  0x39   : > { %3229 = sst [smem:[#allocation37_spill]] %s2526_s30  ;;  %p51_p13 = scmp.eq.s32.totalorder %s50_s13, 0 }
  0x3a   : > { %p180_p0 = scmp.eq.s32.totalorder %s179_s0, 0  ;;  %s3187_s21 = sshll.u32 %s2303_s9, 1 }
  0x3b   : > { %s1690_s4 = sshll.u32 %s2299_s8, 7  ;;  %s3230_s22 = sadd.s32 1, %s2283_s29 }
  0x3c   : > { %s2537_s6 = scalar_select %p51_p13, %s2283_s29, %s3230_s22  }
  0x3d   : > { %s2540_s15 = scalar_select %p180_p0, %s2247_s20, %s182_s12  }
  0x3e   : > { %3231 = sst [smem:[#allocation38_spill]] %s2537_s6  ;;  %s268_s7 = sadd.s32 %s1690_s4, %s3187_s21 }
  0x3f   : > { %3232 = sst [smem:[#allocation39_spill]] %s2540_s15  ;;  %s262_s17 = scalar_lea.vmem [#allocation7], %s1661_s5 }
  0x40   : > { %s273_s13 = sshll.u32 %s262_s17, 4  ;;  %s1665_s0 = sshll.u32 %s268_s7, 3  ;;  %s274_s13 = int_to_ptr.vmem [resolvable:$true] %s273_s13 }
  0x41   : > { %s3233_s1 = sld [smem:[#allocation43_spill]]  ;;  %p1779_p1 = pnand %p3191_p5, %p2507_p10 }
  0x42   : > { %s3234_s12 = sand.u32 1, %s2311_s11   ;;  %s3235_s21 = smov 16  }
  0x43   : > { %s2553_s5 = scalar_lea.sflag [#allocation8], %s3234_s12  ;;  %s3236_s17 = smov 256  }
  0x44   : > { %s3237_s7 = smov 512   ;;  %s2560_s10 = sadd.s32 4294967295, %s2311_s11  }
  0x45   : > { %s1652_s16 = sadd.s32 4294967294, %s2311_s11   ;;  %p67_p3 = scmp.eq.s32.totalorder %s2560_s10, 0 }
  0x46   : > { %p192_p6 = scmp.ne.s32.totalorder %s2247_s20, %s2243_s19  ;;  %p193_p7 = scmp.eq.s32.totalorder %s2560_s10, 7 }
  0x47   : > { %s270_s22 = scalar_lea.hbm %s3233_s1, %s1665_s0  ;;  %p2572_p9 = por %p67_p3, %p66_p4 }
  0x48   : > { %s271_s4 = sshll.u32 %s270_s22, 4  ;;  %p2581_p10 = por %p94_p8, %p67_p3  ;;  %s272_s4 = int_to_ptr.hbm [resolvable:$true] %s271_s4 }
  0x49   : > { %1781 = dma.hbm_to_vmem [thread:$0]  (!%p1779_p1), %s272_s4, 8192, %s274_s13, %s2553_s5, %s3237_s7, %s3236_s17, %s3235_s21  }
  0x4a   : > { %p2585_p11 = por %p193_p7, %p192_p6  ;;  %p198_p12 = scmp.ne.s32.totalorder %s2243_s19, %s2239_s18 }
  0x4b   : > { %p199_p13 = scmp.eq.s32.totalorder %s1652_s16, 7  ;;  %p1653_p0 = scmp.ge.s32.totalorder %s2311_s11, 1 }
  0x4c   : > { %s3240_s0 = scalar_select %p2585_p11, 1, 0 }
  0x4d   : > { %s3242_s27 = sld [smem:[#allocation24_spill]]  ;;  %p206_p4 = scmp.lt.s32.totalorder %s2311_s11, 9 }
  0x4e   : > { %3241 = sst [smem:[#allocation40_spill]] %s3240_s0  ;;  %p2593_p1 = por %p199_p13, %p198_p12 }
  0x4f   : > { %s3243_s3 = sld [smem:[#allocation23_spill]]  ;;  %p2600_p8 = pnand %p1653_p0, %p206_p4 }
  0x50   : > { %s3244_s24 = scalar_select %p2593_p1, 1, 0 }
  0x51   : > { %s3246_s12 = sld [smem:[#allocation45_spill]]  ;;  %p1771_p6 = pneg %p2600_p8 }
  0x52   : > { %3245 = sst [smem:[#allocation23_spill]] %s3244_s24  ;;  %s2316_s16 = smov [#allocation10]  }
  0x53   : > { %s219_s6 = sshll.u32 %s2316_s16, 4  ;;  %p1772_p7 = pnand %p1771_p6, %p67_p3  ;;  %s220_s6 = int_to_ptr.vmem [resolvable:$true] %s219_s6 }
  0x54   : > { %s2317_s22 = smov 128   ;;  %s2318_s4 = smov 8  }
  0x55   : > { %p105_p12 = scmp.eq.s32.totalorder %s2518_s14, 0  ;;  %p114_p13 = scmp.ne.s32.totalorder %s2259_s23, %s3242_s27 }
  0x56   : > { %p120_p0 = scmp.ne.s32.totalorder %s3242_s27, %s3243_s3  ;;  %s285_s30 = sand.u32 1, %s2259_s23  }
  0x57   : > { %s217_s1 = sshll.u32 %s3246_s12, 4  ;;  %s107_s12 = sadd.s32 1, %s2259_s23  ;;  %s218_s1 = int_to_ptr.hbm [resolvable:$true] %s217_s1 }
  0x58   : > { %1774 = dma.hbm_to_vmem [thread:$0]  (!%p1772_p7), %s218_s1, 8192, %s220_s6, [#allocation11], %s2317_s22, %s2317_s22, %s2318_s4  }
  0x59   : > { %s2615_s29 = scalar_select %p105_p12, %s2259_s23, %s107_s12  }
  0x5a   : > { %p116_p4 = por %p114_p13, %p61_p2  ;;  %p2621_p5 = por %p120_p0, %p67_p3 }
  0x5b   : > { %3248 = sst [smem:[#allocation41_spill]] %s2615_s29  ;;  %s3250_s26 = sshll.u32 %s2303_s9, 1 }
  0x5c   : > { %s3251_s1 = sld [smem:[#allocation44_spill]]  ;;  %s1666_s6 = sshll.u32 %s285_s30, 1 }
  0x5d   : > { %s3252_s22 = sld [smem:[#allocation34_spill]]  ;;  %s287_s27 = scalar_lea.vmem [#allocation9], %s1666_s6 }
  0x5e   : > { %s295_s3 = sshll.u32 %s287_s27, 4  ;;  %p3253_p6 = scmp.lt.s32.totalorder %s2311_s11, 8  ;;  %s296_s3 = int_to_ptr.vmem [resolvable:$true] %s295_s3 }
  0x5f   : > { %s1668_s12 = sshll.u32 %s285_s30, 8  ;;  %s1691_s18 = sshll.u32 %s2303_s9, 4 }
  0x60   : > { %p1782_p7 = pnand %p3253_p6, %p116_p4  ;;  %s306_s29 = scalar_lea.vmem [#allocation12], %s1668_s12 }
  0x61   : > { %s314_s24 = sshll.u32 %s306_s29, 4  ;;  %s3254_s19 = sld [smem:[#allocation46_spill]]  ;;  %s315_s24 = int_to_ptr.vmem [resolvable:$true] %s314_s24 }
  0x62   : > { %s291_s14 = scalar_lea.hbm %s3251_s1, %s3250_s26  ;;  %s328_s30 = sand.u32 (!%p2600_p8), 1, %s2560_s10  }
  0x63   : > { %s293_s4 = sshll.u32 %s291_s14, 4  ;;  %s330_s29 = sand.u32 (!%p2600_p8), 1, %s2279_s28   ;;  %s294_s4 = int_to_ptr.hbm [resolvable:$true] %s293_s4 }
  0x64   : > { %1784 = dma.hbm_to_vmem [thread:$0]  (!%p1782_p7), %s294_s4, 32, %s296_s3, %s2553_s5  }
  0x65   : > { %326 = sbr.rel (%p2600_p8) target bundleno = 985 (0x3d9), region = 40  ;;  %s1672_s15 = sshll.u32 (!%p2600_p8), %s330_s29, 8 }
  0x66   : > { %s329_s5 = scalar_lea.sflag (!%p2600_p8), [#allocation5], %s328_s30  ;;  %s2646_s1 = scalar_lea.vmem (!%p2600_p8), [#allocation4], %s1672_s15 }
  0x67   : > { %s311_s20 = scalar_lea.hbm %s3254_s19, %s1691_s18 }
  0x68   : > { %s312_s26 = sshll.u32 %s311_s20, 4  ;;  %s313_s26 = int_to_ptr.hbm [resolvable:$true] %s312_s26 }
  0x69   : > { %1787 = dma.hbm_to_vmem [thread:$0]  (!%p1782_p7), %s313_s26, 4096, %s315_s24, %s3252_s22, %s3237_s7, %s3236_s17, %s3235_s21  }
  0x6a   : > { %2214 = dma.done.wait (%p2572_p9), %s329_s5, 4096  }
  0x6b   : > { %2216 = vsyncadd (%p2572_p9), %s329_s5, 4294963200  ;;  %s340_s18 = sand.u32 1, %s2267_s25   ;;  %s339_s23 = scalar_lea.sflag [#allocation8], %s328_s30 }
  0x6c   : > { %s1673_s19 = sshll.u32 %s340_s18, 9 }
  0x6d   : > { %s2653_s8 = scalar_lea.vmem [#allocation7], %s1673_s19 }
  0x6e   : > { %2218 = dma.done.wait (%p2581_p10), %s339_s23, 8192  }
  0x6f   : > { %2220 = vsyncadd (%p2581_p10), %s339_s23, 4294959104  ;;  %s3255_s21 = sld [smem:[#allocation24_spill]] }
  0x75   : > { %s350_s17 = sand.u32 1, %s3255_s21  }
  0x76   : > { %s2660_s7 = sshll.u32 %s350_s17, 1 }
  0x77   : > { %s352_s2 = scalar_lea.vmem [#allocation9], %s2660_s7 }
  0x78   : > { %2222 = dma.done.wait (%p2621_p5), %s339_s23, 32  }
  0x79   : > { %2224 = vsyncadd (%p2621_p5), %s339_s23, 4294967264 }
  0x7a   : > { %2226 = dma.done.wait (%p67_p3), [#allocation11], 8192  }
  0x7b   : > { %2228 = vsyncadd (%p67_p3), [#allocation11], 4294959104  ;;  %s1676_s13 = sshll.u32 %s350_s17, 8 }
  0x7c   : > { %s2671_s0 = scalar_lea.vmem [#allocation12], %s1676_s13 }
  0x7d   : > { %2230 = dma.done.wait (%p2621_p5), %s329_s5, 4096  }
  0x7e   : > { %2232 = vsyncadd (%p2621_p5), %s329_s5, 4294963200  ;;  %s3256_s24 = sld [smem:[#allocation21_spill]] }
  0x7f   : > { %s3257_s14 = sld [smem:[#allocation28_spill]] }
  0x84   : > { %s407_s6 = sand.u32 1, %s3256_s24  }
  0x85   : > { %p418_p2 = scmp.eq.s32.totalorder %s3257_s14, 0  ;;  %s1677_s22 = sshll.u32 %s407_s6, 8 }
  0x86   : > { %s2681_s4 = scalar_lea.vmem [#allocation13], %s1677_s22  ;;  %p1678_p3 = scmp.ne.s32.totalorder %s3257_s14, 0 }
  0x88   : > { %421 = sbr.rel (%p1678_p3) target bundleno = 174 (0xae), region = 64 }
  0x8d   : > { %v2319_v0 = vmov 0.0  }
  0x8e   : > { %422 = vst [vmem:[#allocation2 + $0xb0] sm:$0xff] %v2319_v0 }
  0x8f   : > { %423 = vst [vmem:[#allocation2] sm:$0xff] %v2319_v0 }
  0x90   : > { %424 = vst [vmem:[#allocation2 + $0xd8] sm:$0xff] %v2319_v0 }
  0x91   : > { %425 = vst [vmem:[#allocation2 + $0x18] sm:$0xff] %v2319_v0 }
  0x92   : > { %426 = vst [vmem:[#allocation2 + $0x50] sm:$0xff] %v2319_v0 }
  0x93   : > { %427 = vst [vmem:[#allocation2 + $0x68] sm:$0xff] %v2319_v0 }
  0x94   : > { %428 = vst [vmem:[#allocation2 + $0x30] sm:$0xff] %v2319_v0 }
  0x95   : > { %429 = vst [vmem:[#allocation2 + $0x48] sm:$0xff] %v2319_v0 }
  0x96   : > { %430 = vst [vmem:[#allocation2 + $0x80] sm:$0xff] %v2319_v0 }
  0x97   : > { %431 = vst [vmem:[#allocation2 + $0x88] sm:$0xff] %v2319_v0 }
  0x98   : > { %432 = vst [vmem:[#allocation2 + $0xe8] sm:$0xff] %v2319_v0 }
  0x99   : > { %433 = vst [vmem:[#allocation2 + $0xb8] sm:$0xff] %v2319_v0 }
  0x9a   : > { %434 = vst [vmem:[#allocation2 + $0x60] sm:$0xff] %v2319_v0 }
  0x9b   : > { %435 = vst [vmem:[#allocation2 + $0xf0] sm:$0xff] %v2319_v0 }
  0x9c   : > { %436 = vst [vmem:[#allocation2 + $0x8] sm:$0xff] %v2319_v0 }
  0x9d   : > { %437 = vst [vmem:[#allocation2 + $0x78] sm:$0xff] %v2319_v0 }
  0x9e   : > { %438 = vst [vmem:[#allocation2 + $0x38] sm:$0xff] %v2319_v0 }
  0x9f   : > { %439 = vst [vmem:[#allocation2 + $0x58] sm:$0xff] %v2319_v0 }
  0xa0   : > { %440 = vst [vmem:[#allocation2 + $0x40] sm:$0xff] %v2319_v0 }
  0xa1   : > { %441 = vst [vmem:[#allocation2 + $0xc8] sm:$0xff] %v2319_v0 }
  0xa2   : > { %442 = vst [vmem:[#allocation2 + $0xe0] sm:$0xff] %v2319_v0 }
  0xa3   : > { %443 = vst [vmem:[#allocation2 + $0x90] sm:$0xff] %v2319_v0 }
  0xa4   : > { %444 = vst [vmem:[#allocation2 + $0x70] sm:$0xff] %v2319_v0 }
  0xa5   : > { %445 = vst [vmem:[#allocation2 + $0xc0] sm:$0xff] %v2319_v0 }
  0xa6   : > { %446 = vst [vmem:[#allocation2 + $0xa8] sm:$0xff] %v2319_v0 }
  0xa7   : > { %447 = vst [vmem:[#allocation2 + $0xd0] sm:$0xff] %v2319_v0 }
  0xa8   : > { %448 = vst [vmem:[#allocation2 + $0x10] sm:$0xff] %v2319_v0 }
  0xa9   : > { %449 = vst [vmem:[#allocation2 + $0x28] sm:$0xff] %v2319_v0 }
  0xaa   : > { %450 = vst [vmem:[#allocation2 + $0xa0] sm:$0xff] %v2319_v0 }
  0xab   : > { %451 = vst [vmem:[#allocation2 + $0xf8] sm:$0xff] %v2319_v0 }
  0xac   : > { %452 = vst [vmem:[#allocation2 + $0x20] sm:$0xff] %v2319_v0 }
  0xad   : > { %453 = vst [vmem:[#allocation2 + $0x98] sm:$0xff] %v2319_v0 }
  0xae PF: > { %s3258_s10 = sld [smem:[#allocation29_spill]] }
  0xb4   : > { %p454_p5 = scmp.eq.s32.totalorder %s3258_s10, 0 }
  0xb6   : > { %p455_p9 = pnand %p454_p5, %p418_p2 }
  0xb8   : > { %458 = sbr.rel (%p455_p9) target bundleno = 206 (0xce), region = 68 }
  0xbd   : > { %v2320_v1 = vmov 0.0  }
  0xbe   : > { %459 = vst [vmem:[#allocation3] sm:$0xff] %v2320_v1 }
  0xbf   : > { %460 = vst [vmem:[#allocation3 + $0x48] sm:$0xff] %v2320_v1 }
  0xc0   : > { %461 = vst [vmem:[#allocation3 + $0x68] sm:$0xff] %v2320_v1 }
  0xc1   : > { %462 = vst [vmem:[#allocation3 + $0x78] sm:$0xff] %v2320_v1 }
  0xc2   : > { %463 = vst [vmem:[#allocation3 + $0x8] sm:$0xff] %v2320_v1 }
  0xc3   : > { %464 = vst [vmem:[#allocation3 + $0x50] sm:$0xff] %v2320_v1 }
  0xc4   : > { %465 = vst [vmem:[#allocation3 + $0x40] sm:$0xff] %v2320_v1 }
  0xc5   : > { %466 = vst [vmem:[#allocation3 + $0x38] sm:$0xff] %v2320_v1 }
  0xc6   : > { %467 = vst [vmem:[#allocation3 + $0x70] sm:$0xff] %v2320_v1 }
  0xc7   : > { %468 = vst [vmem:[#allocation3 + $0x60] sm:$0xff] %v2320_v1 }
  0xc8   : > { %469 = vst [vmem:[#allocation3 + $0x18] sm:$0xff] %v2320_v1 }
  0xc9   : > { %470 = vst [vmem:[#allocation3 + $0x20] sm:$0xff] %v2320_v1 }
  0xca   : > { %471 = vst [vmem:[#allocation3 + $0x10] sm:$0xff] %v2320_v1 }
  0xcb   : > { %472 = vst [vmem:[#allocation3 + $0x30] sm:$0xff] %v2320_v1 }
  0xcc   : > { %473 = vst [vmem:[#allocation3 + $0x28] sm:$0xff] %v2320_v1 }
  0xcd   : > { %474 = vst [vmem:[#allocation3 + $0x58] sm:$0xff] %v2320_v1 }
  0xce PF: > { %v570_v2 = vld [vmem:[%s2653_s8 + $0xf8] sm:$0xff]  ;;  %v568_v4 = vld [vmem:[%s2653_s8 + $0xe8] sm:$0xff]  ;;  %v569_v8 = vld [vmem:[%s2653_s8 + $0xf0] sm:$0xff]  ;;  %s3260_s27 = sld [smem:[#allocation29_spill]] }
  0xcf   : > { %v602_v3 = vld [vmem:[%s2653_s8 + $0x1f8] sm:$0xff]  ;;  %733 = vmatpush.msra.mxu2 %v570_v2  ;;  %v600_v5 = vld [vmem:[%s2653_s8 + $0x1e8] sm:$0xff]  ;;  %v601_v9 = vld [vmem:[%s2653_s8 + $0x1f0] sm:$0xff]  ;;  %603 = vmatpush.msra.mxu0 %v569_v8 }
  0xd0   : > { %798 = vmatpush.msra.mxu3 %v602_v3  ;;  %v566_v6 = vld [vmem:[%s2653_s8 + $0xd8] sm:$0xff]  ;;  %v567_v10 = vld [vmem:[%s2653_s8 + $0xe0] sm:$0xff]  ;;  %668 = vmatpush.msra.mxu1 %v601_v9  ;;  %v564_v12 = vld [vmem:[%s2653_s8 + $0xc8] sm:$0xff] }
  0xd1   : > { %v598_v7 = vld [vmem:[%s2653_s8 + $0x1d8] sm:$0xff]  ;;  %734 = vmatpush.msra.mxu2 %v568_v4  ;;  %v599_v11 = vld [vmem:[%s2653_s8 + $0x1e0] sm:$0xff]  ;;  %v596_v13 = vld [vmem:[%s2653_s8 + $0x1c8] sm:$0xff]  ;;  %604 = vmatpush.msra.mxu0 %v567_v10 }
  0xd2   : > { %799 = vmatpush.msra.mxu3 %v600_v5  ;;  %v565_v14 = vld [vmem:[%s2653_s8 + $0xd0] sm:$0xff]  ;;  %669 = vmatpush.msra.mxu1 %v599_v11  ;;  %v562_v16 = vld [vmem:[%s2653_s8 + $0xb8] sm:$0xff]  ;;  %v563_v18 = vld [vmem:[%s2653_s8 + $0xc0] sm:$0xff] }
  0xd3   : > { %735 = vmatpush.msra.mxu2 %v566_v6  ;;  %v597_v15 = vld [vmem:[%s2653_s8 + $0x1d0] sm:$0xff]  ;;  %v594_v17 = vld [vmem:[%s2653_s8 + $0x1b8] sm:$0xff]  ;;  %v595_v19 = vld [vmem:[%s2653_s8 + $0x1c0] sm:$0xff]  ;;  %605 = vmatpush.msra.mxu0 %v565_v14 }
  0xd4   : > { %800 = vmatpush.msra.mxu3 %v598_v7  ;;  %670 = vmatpush.msra.mxu1 %v597_v15  ;;  %v560_v20 = vld [vmem:[%s2653_s8 + $0xa8] sm:$0xff]  ;;  %v561_v22 = vld [vmem:[%s2653_s8 + $0xb0] sm:$0xff]  ;;  %v558_v24 = vld [vmem:[%s2653_s8 + $0x98] sm:$0xff]  ;;  %p1679_p10 = scmp.ne.s32.totalorder %s3260_s27, 0 }
  0xd5   : > { %736 = vmatpush.msra.mxu2 %v564_v12  ;;  %v592_v21 = vld [vmem:[%s2653_s8 + $0x1a8] sm:$0xff]  ;;  %v593_v23 = vld [vmem:[%s2653_s8 + $0x1b0] sm:$0xff]  ;;  %606 = vmatpush.msra.mxu0 %v563_v18  ;;  %v590_v25 = vld [vmem:[%s2653_s8 + $0x198] sm:$0xff]  ;;  %s3261_s3 = sld [smem:[#allocation28_spill]] (!%p1679_p10) }
  0xd6   : > { %801 = vmatpush.msra.mxu3 %v596_v13  ;;  %671 = vmatpush.msra.mxu1 %v595_v19  ;;  %v559_v26 = vld [vmem:[%s2653_s8 + $0xa0] sm:$0xff]  ;;  %v556_v28 = vld [vmem:[%s2653_s8 + $0x88] sm:$0xff]  ;;  %v557_v30 = vld [vmem:[%s2653_s8 + $0x90] sm:$0xff] }
  0xd7   : > { %737 = vmatpush.msra.mxu2 %v562_v16  ;;  %v591_v27 = vld [vmem:[%s2653_s8 + $0x1a0] sm:$0xff]  ;;  %607 = vmatpush.msra.mxu0 %v561_v22  ;;  %v588_v29 = vld [vmem:[%s2653_s8 + $0x188] sm:$0xff]  ;;  %v589_v31 = vld [vmem:[%s2653_s8 + $0x190] sm:$0xff] }
  0xd8   : > { %802 = vmatpush.msra.mxu3 %v594_v17  ;;  %672 = vmatpush.msra.mxu1 %v593_v23  ;;  %v554_v32 = vld [vmem:[%s2653_s8 + $0x78] sm:$0xff]  ;;  %v555_v34 = vld [vmem:[%s2653_s8 + $0x80] sm:$0xff]  ;;  %v552_v36 = vld [vmem:[%s2653_s8 + $0x68] sm:$0xff] }
  0xd9   : > { %738 = vmatpush.msra.mxu2 %v560_v20  ;;  %608 = vmatpush.msra.mxu0 %v559_v26  ;;  %v586_v33 = vld [vmem:[%s2653_s8 + $0x178] sm:$0xff]  ;;  %v587_v35 = vld [vmem:[%s2653_s8 + $0x180] sm:$0xff]  ;;  %v584_v37 = vld [vmem:[%s2653_s8 + $0x168] sm:$0xff] }
  0xda   : > { %803 = vmatpush.msra.mxu3 %v592_v21  ;;  %673 = vmatpush.msra.mxu1 %v591_v27  ;;  %v553_v38 = vld [vmem:[%s2653_s8 + $0x70] sm:$0xff]  ;;  %v550_v40 = vld [vmem:[%s2653_s8 + $0x58] sm:$0xff]  ;;  %v551_v42 = vld [vmem:[%s2653_s8 + $0x60] sm:$0xff] }
  0xdb   : > { %739 = vmatpush.msra.mxu2 %v558_v24  ;;  %609 = vmatpush.msra.mxu0 %v557_v30  ;;  %v585_v39 = vld [vmem:[%s2653_s8 + $0x170] sm:$0xff]  ;;  %v582_v41 = vld [vmem:[%s2653_s8 + $0x158] sm:$0xff]  ;;  %v583_v43 = vld [vmem:[%s2653_s8 + $0x160] sm:$0xff]  ;;  %s1680_s12 = sshll.u32 (!%p1679_p10), %s3261_s3, 8 }
  0xdc   : > { %804 = vmatpush.msra.mxu3 %v590_v25  ;;  %674 = vmatpush.msra.mxu1 %v589_v31  ;;  %v548_v44 = vld [vmem:[%s2653_s8 + $0x48] sm:$0xff]  ;;  %v549_v46 = vld [vmem:[%s2653_s8 + $0x50] sm:$0xff]  ;;  %v546_v48 = vld [vmem:[%s2653_s8 + $0x38] sm:$0xff]  ;;  %s2913_s20 = scalar_lea.vmem (!%p1679_p10), [#allocation10], %s1680_s12 }
  0xdd   : > { %740 = vmatpush.msra.mxu2 %v556_v28  ;;  %610 = vmatpush.msra.mxu0 %v555_v34  ;;  %v580_v45 = vld [vmem:[%s2653_s8 + $0x148] sm:$0xff]  ;;  %v581_v47 = vld [vmem:[%s2653_s8 + $0x150] sm:$0xff]  ;;  %v578_v49 = vld [vmem:[%s2653_s8 + $0x138] sm:$0xff] }
  0xde   : > { %805 = vmatpush.msra.mxu3 %v588_v29  ;;  %675 = vmatpush.msra.mxu1 %v587_v35  ;;  %v547_v50 = vld [vmem:[%s2653_s8 + $0x40] sm:$0xff]  ;;  %v544_v52 = vld [vmem:[%s2653_s8 + $0x28] sm:$0xff]  ;;  %v545_v54 = vld [vmem:[%s2653_s8 + $0x30] sm:$0xff] }
  0xdf   : > { %741 = vmatpush.msra.mxu2 %v554_v32  ;;  %611 = vmatpush.msra.mxu0 %v553_v38  ;;  %v579_v51 = vld [vmem:[%s2653_s8 + $0x140] sm:$0xff]  ;;  %v576_v53 = vld [vmem:[%s2653_s8 + $0x128] sm:$0xff]  ;;  %v577_v55 = vld [vmem:[%s2653_s8 + $0x130] sm:$0xff] }
  0xe0   : > { %806 = vmatpush.msra.mxu3 %v586_v33  ;;  %676 = vmatpush.msra.mxu1 %v585_v39  ;;  %v542_v56 = vld [vmem:[%s2653_s8 + $0x18] sm:$0xff]  ;;  %v543_v58 = vld [vmem:[%s2653_s8 + $0x20] sm:$0xff]  ;;  %v540_v60 = vld [vmem:[%s2653_s8 + $0x8] sm:$0xff] }
  0xe1   : > { %742 = vmatpush.msra.mxu2 %v552_v36  ;;  %612 = vmatpush.msra.mxu0 %v551_v42  ;;  %v574_v57 = vld [vmem:[%s2653_s8 + $0x118] sm:$0xff]  ;;  %v575_v59 = vld [vmem:[%s2653_s8 + $0x120] sm:$0xff]  ;;  %v572_v61 = vld [vmem:[%s2653_s8 + $0x108] sm:$0xff] }
  0xe2   : > { %807 = vmatpush.msra.mxu3 %v584_v37  ;;  %677 = vmatpush.msra.mxu1 %v583_v43  ;;  %v2748_v62 = vld [vmem:[%s2646_s1] sm:$0xff]  ;;  %v2751_v63 = vld [vmem:[%s2646_s1 + $0x8] sm:$0xff]  ;;  %v541_v0 = vld [vmem:[%s2653_s8 + $0x10] sm:$0xff] }
  0xe3   : > { %743 = vmatpush.msra.mxu2 %v550_v40  ;;  %613 = vmatpush.msra.mxu0 %v549_v46  ;;  %v573_v1 = vld [vmem:[%s2653_s8 + $0x110] sm:$0xff]  ;;  %v539_v2 = vld [vmem:[%s2653_s8] sm:$0xff]  ;;  %v2765_v5 = vld [vmem:[%s2646_s1 + $0x18] sm:$0xff] }
  0xe4   : > { %808 = vmatpush.msra.mxu3 %v582_v41  ;;  %678 = vmatpush.msra.mxu1 %v581_v47  ;;  %v571_v3 = vld [vmem:[%s2653_s8 + $0x100] sm:$0xff]  ;;  %v2762_v4 = vld [vmem:[%s2646_s1 + $0x10] sm:$0xff]  ;;  %v2775_v7 = vld [vmem:[%s2646_s1 + $0x28] sm:$0xff] }
  0xe5   : > { %744 = vmatpush.msra.mxu2 %v548_v44  ;;  %614 = vmatpush.msra.mxu0 %v547_v50  ;;  %v2772_v6 = vld [vmem:[%s2646_s1 + $0x20] sm:$0xff]  ;;  %v2782_v8 = vld [vmem:[%s2646_s1 + $0x30] sm:$0xff]  ;;  %v2785_v9 = vld [vmem:[%s2646_s1 + $0x38] sm:$0xff] }
  0xe6   : > { %809 = vmatpush.msra.mxu3 %v580_v45  ;;  %679 = vmatpush.msra.mxu1 %v579_v51  ;;  %v2792_v10 = vld [vmem:[%s2646_s1 + $0x40] sm:$0xff]  ;;  %v2795_v11 = vld [vmem:[%s2646_s1 + $0x48] sm:$0xff]  ;;  %v2802_v12 = vld [vmem:[%s2646_s1 + $0x50] sm:$0xff] }
  0xe7   : > { %745 = vmatpush.msra.mxu2 %v546_v48  ;;  %615 = vmatpush.msra.mxu0 %v545_v54  ;;  %v2805_v13 = vld [vmem:[%s2646_s1 + $0x58] sm:$0xff]  ;;  %v2812_v14 = vld [vmem:[%s2646_s1 + $0x60] sm:$0xff]  ;;  %v2815_v15 = vld [vmem:[%s2646_s1 + $0x68] sm:$0xff] }
  0xe8   : > { %810 = vmatpush.msra.mxu3 %v578_v49  ;;  %680 = vmatpush.msra.mxu1 %v577_v55  ;;  %v2822_v16 = vld [vmem:[%s2646_s1 + $0x70] sm:$0xff]  ;;  %v2825_v17 = vld [vmem:[%s2646_s1 + $0x78] sm:$0xff]  ;;  %v2832_v18 = vld [vmem:[%s2646_s1 + $0x80] sm:$0xff] }
  0xe9   : > { %746 = vmatpush.msra.mxu2 %v544_v52  ;;  %616 = vmatpush.msra.mxu0 %v543_v58  ;;  %v2835_v19 = vld [vmem:[%s2646_s1 + $0x88] sm:$0xff]  ;;  %v2842_v20 = vld [vmem:[%s2646_s1 + $0x90] sm:$0xff]  ;;  %v2845_v21 = vld [vmem:[%s2646_s1 + $0x98] sm:$0xff] }
  0xea   : > { %811 = vmatpush.msra.mxu3 %v576_v53  ;;  %681 = vmatpush.msra.mxu1 %v575_v59  ;;  %v2852_v22 = vld [vmem:[%s2646_s1 + $0xa0] sm:$0xff]  ;;  %v2855_v23 = vld [vmem:[%s2646_s1 + $0xa8] sm:$0xff]  ;;  %v2862_v24 = vld [vmem:[%s2646_s1 + $0xb0] sm:$0xff] }
  0xeb   : > { %747 = vmatpush.msra.mxu2 %v542_v56  ;;  %617 = vmatpush.msra.mxu0 %v541_v0  ;;  %v2865_v25 = vld [vmem:[%s2646_s1 + $0xb8] sm:$0xff]  ;;  %v2872_v26 = vld [vmem:[%s2646_s1 + $0xc0] sm:$0xff]  ;;  %v2875_v27 = vld [vmem:[%s2646_s1 + $0xc8] sm:$0xff] }
  0xec   : > { %812 = vmatpush.msra.mxu3 %v574_v57  ;;  %682 = vmatpush.msra.mxu1 %v573_v1  ;;  %v2882_v28 = vld [vmem:[%s2646_s1 + $0xd0] sm:$0xff]  ;;  %v2885_v29 = vld [vmem:[%s2646_s1 + $0xd8] sm:$0xff]  ;;  %v2892_v30 = vld [vmem:[%s2646_s1 + $0xe0] sm:$0xff] }
  0xed   : > { %748 = vmatpush.msra.mxu2 %v540_v60  ;;  %618 = vmatpush.msra.mxu0 %v539_v2  ;;  %v2895_v31 = vld [vmem:[%s2646_s1 + $0xe8] sm:$0xff]  ;;  %v2902_v32 = vld [vmem:[%s2646_s1 + $0xf0] sm:$0xff]  ;;  %v2905_v33 = vld [vmem:[%s2646_s1 + $0xf8] sm:$0xff] }
  0xee   : > { %813 = vmatpush.msra.mxu3 %v572_v61  ;;  %749 = vmatmul.f32.vlgmr.msra.gmra.mxu2 %v2748_v62  ;;  %v507_v35 = vld [vmem:[#allocation2 + $0xb0] sm:$0xff]  ;;  %v508_v39 = vld [vmem:[#allocation2] sm:$0xff]  ;;  %v509_v45 = vld [vmem:[#allocation2 + $0xd8] sm:$0xff] }
  0xef   : > { %814 = vmatmul.f32.vlgmr.msra.gmra.mxu3 %v2751_v63  ;;  %683 = vmatpush.msra.mxu1 %v571_v3  ;;  %v510_v49 = vld [vmem:[#allocation2 + $0x18] sm:$0xff]  ;;  %v511_v55 = vld [vmem:[#allocation2 + $0x50] sm:$0xff]  ;;  %v512_v59 = vld [vmem:[#allocation2 + $0x68] sm:$0xff] }
  0xf0   : > { %619 = vmatmul.f32.vlgmr.msra.gmra.mxu0 %v2748_v62  ;;  %684 = vmatmul.f32.vlgmr.msra.gmra.mxu1 %v2751_v63  ;;  %v513_v3 = vld [vmem:[#allocation2 + $0x30] sm:$0xff] }
  0xf6   : > { %752 = vmatmul.f32.gmra.mxu2 %v2762_v4 }
  0xf7   : > { %817 = vmatmul.f32.gmra.mxu3 %v2765_v5 }
  0xf8   : > { %622 = vmatmul.f32.gmra.mxu0 %v2762_v4  ;;  %687 = vmatmul.f32.gmra.mxu1 %v2765_v5 }
  0xfe   : > { %755 = vmatmul.f32.gmra.mxu2 %v2772_v6 }
  0xff   : > { %820 = vmatmul.f32.gmra.mxu3 %v2775_v7 }
 0x100   : > { %625 = vmatmul.f32.gmra.mxu0 %v2772_v6  ;;  %690 = vmatmul.f32.gmra.mxu1 %v2775_v7 }
 0x106   : > { %758 = vmatmul.f32.gmra.mxu2 %v2782_v8 }
 0x107   : > { %823 = vmatmul.f32.gmra.mxu3 %v2785_v9 }
 0x108   : > { %628 = vmatmul.f32.gmra.mxu0 %v2782_v8  ;;  %693 = vmatmul.f32.gmra.mxu1 %v2785_v9 }
 0x10e   : > { %761 = vmatmul.f32.gmra.mxu2 %v2792_v10 }
 0x10f   : > { %826 = vmatmul.f32.gmra.mxu3 %v2795_v11 }
 0x110   : > { %631 = vmatmul.f32.gmra.mxu0 %v2792_v10  ;;  %696 = vmatmul.f32.gmra.mxu1 %v2795_v11 }
 0x116   : > { %764 = vmatmul.f32.gmra.mxu2 %v2802_v12 }
 0x117   : > { %829 = vmatmul.f32.gmra.mxu3 %v2805_v13 }
 0x118   : > { %634 = vmatmul.f32.gmra.mxu0 %v2802_v12  ;;  %699 = vmatmul.f32.gmra.mxu1 %v2805_v13 }
 0x11e   : > { %767 = vmatmul.f32.gmra.mxu2 %v2812_v14 }
 0x11f   : > { %832 = vmatmul.f32.gmra.mxu3 %v2815_v15 }
 0x120   : > { %637 = vmatmul.f32.gmra.mxu0 %v2812_v14  ;;  %702 = vmatmul.f32.gmra.mxu1 %v2815_v15 }
 0x126   : > { %770 = vmatmul.f32.gmra.mxu2 %v2822_v16 }
 0x127   : > { %835 = vmatmul.f32.gmra.mxu3 %v2825_v17 }
 0x128   : > { %640 = vmatmul.f32.gmra.mxu0 %v2822_v16  ;;  %705 = vmatmul.f32.gmra.mxu1 %v2825_v17 }
 0x12e   : > { %773 = vmatmul.f32.gmra.mxu2 %v2832_v18 }
 0x12f   : > { %838 = vmatmul.f32.gmra.mxu3 %v2835_v19 }
 0x130   : > { %643 = vmatmul.f32.gmra.mxu0 %v2832_v18  ;;  %708 = vmatmul.f32.gmra.mxu1 %v2835_v19 }
 0x136   : > { %776 = vmatmul.f32.gmra.mxu2 %v2842_v20 }
 0x137   : > { %841 = vmatmul.f32.gmra.mxu3 %v2845_v21 }
 0x138   : > { %646 = vmatmul.f32.gmra.mxu0 %v2842_v20  ;;  %711 = vmatmul.f32.gmra.mxu1 %v2845_v21 }
 0x13e   : > { %779 = vmatmul.f32.gmra.mxu2 %v2852_v22 }
 0x13f   : > { %844 = vmatmul.f32.gmra.mxu3 %v2855_v23 }
 0x140   : > { %649 = vmatmul.f32.gmra.mxu0 %v2852_v22  ;;  %714 = vmatmul.f32.gmra.mxu1 %v2855_v23 }
 0x146   : > { %782 = vmatmul.f32.gmra.mxu2 %v2862_v24 }
 0x147   : > { %847 = vmatmul.f32.gmra.mxu3 %v2865_v25 }
 0x148   : > { %652 = vmatmul.f32.gmra.mxu0 %v2862_v24  ;;  %717 = vmatmul.f32.gmra.mxu1 %v2865_v25 }
 0x14e   : > { %785 = vmatmul.f32.gmra.mxu2 %v2872_v26 }
 0x14f   : > { %850 = vmatmul.f32.gmra.mxu3 %v2875_v27 }
 0x150   : > { %655 = vmatmul.f32.gmra.mxu0 %v2872_v26  ;;  %720 = vmatmul.f32.gmra.mxu1 %v2875_v27 }
 0x156   : > { %788 = vmatmul.f32.gmra.mxu2 %v2882_v28 }
 0x157   : > { %853 = vmatmul.f32.gmra.mxu3 %v2885_v29 }
 0x158   : > { %658 = vmatmul.f32.gmra.mxu0 %v2882_v28  ;;  %723 = vmatmul.f32.gmra.mxu1 %v2885_v29 }
 0x15e   : > { %791 = vmatmul.f32.gmra.mxu2 %v2892_v30 }
 0x15f   : > { %856 = vmatmul.f32.gmra.mxu3 %v2895_v31 }
 0x160   : > { %661 = vmatmul.f32.gmra.mxu0 %v2892_v30  ;;  %726 = vmatmul.f32.gmra.mxu1 %v2895_v31 }
 0x166   : > { %794 = vmatmul.f32.gmra.mxu2 %v2902_v32 }
 0x167   : > { %859 = vmatmul.f32.gmra.mxu3 %v2905_v33 }
 0x168   : > { %664 = vmatmul.f32.gmra.mxu0 %v2902_v32  ;;  %729 = vmatmul.f32.gmra.mxu1 %v2905_v33 }
 0x16d   : > { %v620_v34 = vpop.f32.mrf.mxu0  ;;  %v685_v36 = vpop.f32.mrf.mxu1 }
 0x16e   : > { %v686_v37 = vadd.f32 %v685_v36, %v620_v34 }
 0x170   : > { %v863_v41 = vadd.f32 %v686_v37, %v507_v35  ;;  %v514_v37 = vld [vmem:[#allocation2 + $0x48] sm:$0xff] }
 0x171   : > { %v750_v38 = vpop.f32.mrf.mxu2 }
 0x172   : > { %v815_v40 = vpop.f32.mrf.mxu3  ;;  %895 = vst [vmem:[#allocation2 + $0xb0] sm:$0xff] %v863_v41 }
 0x173   : > { %v816_v42 = vadd.f32 %v815_v40, %v750_v38 }
 0x175   : > { %v864_v43 = vadd.f32 %v816_v42, %v508_v39  ;;  %v623_v44 = vpop.f32.mrf.mxu0  ;;  %v688_v46 = vpop.f32.mrf.mxu1 }
 0x176   : > { %v689_v47 = vadd.f32 %v688_v46, %v623_v44 }
 0x177   : > { %896 = vst [vmem:[#allocation2] sm:$0xff] %v864_v43  ;;  %v515_v43 = vld [vmem:[#allocation2 + $0x80] sm:$0xff] }
 0x178   : > { %v865_v51 = vadd.f32 %v689_v47, %v509_v45  ;;  %v516_v47 = vld [vmem:[#allocation2 + $0x88] sm:$0xff] }
 0x179   : > { %v753_v48 = vpop.f32.mrf.mxu2 }
 0x17a   : > { %v818_v50 = vpop.f32.mrf.mxu3  ;;  %897 = vst [vmem:[#allocation2 + $0xd8] sm:$0xff] %v865_v51 }
 0x17b   : > { %v819_v52 = vadd.f32 %v818_v50, %v753_v48 }
 0x17d   : > { %v866_v53 = vadd.f32 %v819_v52, %v510_v49  ;;  %v626_v54 = vpop.f32.mrf.mxu0  ;;  %v691_v56 = vpop.f32.mrf.mxu1 }
 0x17e   : > { %v692_v57 = vadd.f32 %v691_v56, %v626_v54 }
 0x17f   : > { %898 = vst [vmem:[#allocation2 + $0x18] sm:$0xff] %v866_v53  ;;  %v517_v53 = vld [vmem:[#allocation2 + $0xe8] sm:$0xff] }
 0x180   : > { %v867_v61 = vadd.f32 %v692_v57, %v511_v55  ;;  %v518_v57 = vld [vmem:[#allocation2 + $0xb8] sm:$0xff] }
 0x181   : > { %v756_v58 = vpop.f32.mrf.mxu2 }
 0x182   : > { %v821_v60 = vpop.f32.mrf.mxu3  ;;  %899 = vst [vmem:[#allocation2 + $0x50] sm:$0xff] %v867_v61 }
 0x183   : > { %v822_v0 = vadd.f32 %v821_v60, %v756_v58 }
 0x185   : > { %v868_v1 = vadd.f32 %v822_v0, %v512_v59  ;;  %v629_v2 = vpop.f32.mrf.mxu0  ;;  %v694_v34 = vpop.f32.mrf.mxu1 }
 0x186   : > { %v695_v35 = vadd.f32 %v694_v34, %v629_v2 }
 0x187   : > { %900 = vst [vmem:[#allocation2 + $0x68] sm:$0xff] %v868_v1  ;;  %v519_v1 = vld [vmem:[#allocation2 + $0x60] sm:$0xff] }
 0x188   : > { %v869_v39 = vadd.f32 %v695_v35, %v513_v3  ;;  %v520_v35 = vld [vmem:[#allocation2 + $0xf0] sm:$0xff] }
 0x189   : > { %v759_v36 = vpop.f32.mrf.mxu2 }
 0x18a   : > { %v824_v38 = vpop.f32.mrf.mxu3  ;;  %901 = vst [vmem:[#allocation2 + $0x30] sm:$0xff] %v869_v39 }
 0x18b   : > { %v825_v40 = vadd.f32 %v824_v38, %v759_v36 }
 0x18d   : > { %v870_v41 = vadd.f32 %v825_v40, %v514_v37  ;;  %v632_v42 = vpop.f32.mrf.mxu0  ;;  %v697_v44 = vpop.f32.mrf.mxu1 }
 0x18e   : > { %v698_v45 = vadd.f32 %v697_v44, %v632_v42 }
 0x18f   : > { %902 = vst [vmem:[#allocation2 + $0x48] sm:$0xff] %v870_v41  ;;  %v521_v41 = vld [vmem:[#allocation2 + $0x8] sm:$0xff] }
 0x190   : > { %v871_v49 = vadd.f32 %v698_v45, %v515_v43  ;;  %v522_v45 = vld [vmem:[#allocation2 + $0x78] sm:$0xff] }
 0x191   : > { %v762_v46 = vpop.f32.mrf.mxu2 }
 0x192   : > { %v827_v48 = vpop.f32.mrf.mxu3  ;;  %903 = vst [vmem:[#allocation2 + $0x80] sm:$0xff] %v871_v49 }
 0x193   : > { %v828_v50 = vadd.f32 %v827_v48, %v762_v46 }
 0x195   : > { %v872_v51 = vadd.f32 %v828_v50, %v516_v47  ;;  %v635_v52 = vpop.f32.mrf.mxu0  ;;  %v700_v54 = vpop.f32.mrf.mxu1 }
 0x196   : > { %v701_v55 = vadd.f32 %v700_v54, %v635_v52 }
 0x197   : > { %904 = vst [vmem:[#allocation2 + $0x88] sm:$0xff] %v872_v51  ;;  %v523_v51 = vld [vmem:[#allocation2 + $0x38] sm:$0xff] }
 0x198   : > { %v873_v59 = vadd.f32 %v701_v55, %v517_v53  ;;  %v524_v55 = vld [vmem:[#allocation2 + $0x58] sm:$0xff] }
 0x199   : > { %v765_v56 = vpop.f32.mrf.mxu2 }
 0x19a   : > { %v830_v58 = vpop.f32.mrf.mxu3  ;;  %905 = vst [vmem:[#allocation2 + $0xe8] sm:$0xff] %v873_v59 }
 0x19b   : > { %v831_v60 = vadd.f32 %v830_v58, %v765_v56 }
 0x19d   : > { %v874_v61 = vadd.f32 %v831_v60, %v518_v57  ;;  %v638_v0 = vpop.f32.mrf.mxu0  ;;  %v703_v2 = vpop.f32.mrf.mxu1 }
 0x19e   : > { %v704_v3 = vadd.f32 %v703_v2, %v638_v0 }
 0x19f   : > { %906 = vst [vmem:[#allocation2 + $0xb8] sm:$0xff] %v874_v61  ;;  %v525_v61 = vld [vmem:[#allocation2 + $0x40] sm:$0xff] }
 0x1a0   : > { %v875_v37 = vadd.f32 %v704_v3, %v519_v1  ;;  %v526_v3 = vld [vmem:[#allocation2 + $0xc8] sm:$0xff] }
 0x1a1   : > { %v768_v34 = vpop.f32.mrf.mxu2 }
 0x1a2   : > { %v833_v36 = vpop.f32.mrf.mxu3  ;;  %907 = vst [vmem:[#allocation2 + $0x60] sm:$0xff] %v875_v37 }
 0x1a3   : > { %v834_v38 = vadd.f32 %v833_v36, %v768_v34 }
 0x1a5   : > { %v876_v39 = vadd.f32 %v834_v38, %v520_v35  ;;  %v641_v40 = vpop.f32.mrf.mxu0  ;;  %v706_v42 = vpop.f32.mrf.mxu1 }
 0x1a6   : > { %v707_v43 = vadd.f32 %v706_v42, %v641_v40 }
 0x1a7   : > { %908 = vst [vmem:[#allocation2 + $0xf0] sm:$0xff] %v876_v39  ;;  %v527_v39 = vld [vmem:[#allocation2 + $0xe0] sm:$0xff] }
 0x1a8   : > { %v877_v47 = vadd.f32 %v707_v43, %v521_v41  ;;  %v528_v43 = vld [vmem:[#allocation2 + $0x90] sm:$0xff] }
 0x1a9   : > { %v771_v44 = vpop.f32.mrf.mxu2 }
 0x1aa   : > { %v836_v46 = vpop.f32.mrf.mxu3  ;;  %909 = vst [vmem:[#allocation2 + $0x8] sm:$0xff] %v877_v47 }
 0x1ab   : > { %v837_v48 = vadd.f32 %v836_v46, %v771_v44 }
 0x1ad   : > { %v878_v49 = vadd.f32 %v837_v48, %v522_v45  ;;  %v644_v50 = vpop.f32.mrf.mxu0  ;;  %v709_v52 = vpop.f32.mrf.mxu1 }
 0x1ae   : > { %v710_v53 = vadd.f32 %v709_v52, %v644_v50 }
 0x1af   : > { %910 = vst [vmem:[#allocation2 + $0x78] sm:$0xff] %v878_v49  ;;  %v529_v49 = vld [vmem:[#allocation2 + $0x70] sm:$0xff] }
 0x1b0   : > { %v879_v57 = vadd.f32 %v710_v53, %v523_v51  ;;  %v530_v53 = vld [vmem:[#allocation2 + $0xc0] sm:$0xff] }
 0x1b1   : > { %v774_v54 = vpop.f32.mrf.mxu2 }
 0x1b2   : > { %v839_v56 = vpop.f32.mrf.mxu3  ;;  %911 = vst [vmem:[#allocation2 + $0x38] sm:$0xff] %v879_v57 }
 0x1b3   : > { %v840_v58 = vadd.f32 %v839_v56, %v774_v54 }
 0x1b5   : > { %v880_v59 = vadd.f32 %v840_v58, %v524_v55  ;;  %v647_v60 = vpop.f32.mrf.mxu0  ;;  %v712_v0 = vpop.f32.mrf.mxu1 }
 0x1b6   : > { %v713_v1 = vadd.f32 %v712_v0, %v647_v60 }
 0x1b7   : > { %912 = vst [vmem:[#allocation2 + $0x58] sm:$0xff] %v880_v59  ;;  %v531_v59 = vld [vmem:[#allocation2 + $0xa8] sm:$0xff] }
 0x1b8   : > { %v881_v35 = vadd.f32 %v713_v1, %v525_v61  ;;  %v532_v1 = vld [vmem:[#allocation2 + $0xd0] sm:$0xff] }
 0x1b9   : > { %v777_v2 = vpop.f32.mrf.mxu2 }
 0x1ba   : > { %v842_v34 = vpop.f32.mrf.mxu3  ;;  %913 = vst [vmem:[#allocation2 + $0x40] sm:$0xff] %v881_v35 }
 0x1bb   : > { %v843_v36 = vadd.f32 %v842_v34, %v777_v2 }
 0x1bd   : > { %v882_v37 = vadd.f32 %v843_v36, %v526_v3  ;;  %v650_v38 = vpop.f32.mrf.mxu0  ;;  %v715_v40 = vpop.f32.mrf.mxu1 }
 0x1be   : > { %v716_v41 = vadd.f32 %v715_v40, %v650_v38 }
 0x1bf   : > { %914 = vst [vmem:[#allocation2 + $0xc8] sm:$0xff] %v882_v37  ;;  %v533_v37 = vld [vmem:[#allocation2 + $0x10] sm:$0xff] }
 0x1c0   : > { %v883_v45 = vadd.f32 %v716_v41, %v527_v39  ;;  %v534_v41 = vld [vmem:[#allocation2 + $0x28] sm:$0xff] }
 0x1c1   : > { %v780_v42 = vpop.f32.mrf.mxu2 }
 0x1c2   : > { %v845_v44 = vpop.f32.mrf.mxu3  ;;  %915 = vst [vmem:[#allocation2 + $0xe0] sm:$0xff] %v883_v45 }
 0x1c3   : > { %v846_v46 = vadd.f32 %v845_v44, %v780_v42 }
 0x1c5   : > { %v884_v47 = vadd.f32 %v846_v46, %v528_v43  ;;  %v653_v48 = vpop.f32.mrf.mxu0  ;;  %v718_v50 = vpop.f32.mrf.mxu1 }
 0x1c6   : > { %v719_v51 = vadd.f32 %v718_v50, %v653_v48 }
 0x1c7   : > { %916 = vst [vmem:[#allocation2 + $0x90] sm:$0xff] %v884_v47  ;;  %v535_v47 = vld [vmem:[#allocation2 + $0xa0] sm:$0xff] }
 0x1c8   : > { %v885_v55 = vadd.f32 %v719_v51, %v529_v49  ;;  %v536_v51 = vld [vmem:[#allocation2 + $0xf8] sm:$0xff] }
 0x1c9   : > { %v783_v52 = vpop.f32.mrf.mxu2 }
 0x1ca   : > { %v848_v54 = vpop.f32.mrf.mxu3  ;;  %917 = vst [vmem:[#allocation2 + $0x70] sm:$0xff] %v885_v55 }
 0x1cb   : > { %v849_v56 = vadd.f32 %v848_v54, %v783_v52 }
 0x1cd   : > { %v886_v57 = vadd.f32 %v849_v56, %v530_v53  ;;  %v656_v58 = vpop.f32.mrf.mxu0  ;;  %v721_v60 = vpop.f32.mrf.mxu1 }
 0x1ce   : > { %v722_v61 = vadd.f32 %v721_v60, %v656_v58 }
 0x1cf   : > { %918 = vst [vmem:[#allocation2 + $0xc0] sm:$0xff] %v886_v57  ;;  %v537_v57 = vld [vmem:[#allocation2 + $0x20] sm:$0xff] }
 0x1d0   : > { %v887_v3 = vadd.f32 %v722_v61, %v531_v59  ;;  %v538_v61 = vld [vmem:[#allocation2 + $0x98] sm:$0xff] }
 0x1d1   : > { %v786_v0 = vpop.f32.mrf.mxu2 }
 0x1d2   : > { %v851_v2 = vpop.f32.mrf.mxu3  ;;  %919 = vst [vmem:[#allocation2 + $0xa8] sm:$0xff] %v887_v3 }
 0x1d3   : > { %v852_v34 = vadd.f32 %v851_v2, %v786_v0 }
 0x1d5   : > { %v888_v35 = vadd.f32 %v852_v34, %v532_v1  ;;  %v659_v36 = vpop.f32.mrf.mxu0  ;;  %v724_v38 = vpop.f32.mrf.mxu1 }
 0x1d6   : > { %v725_v39 = vadd.f32 %v724_v38, %v659_v36 }
 0x1d7   : > { %920 = vst [vmem:[#allocation2 + $0xd0] sm:$0xff] %v888_v35 }
 0x1d8   : > { %v889_v43 = vadd.f32 %v725_v39, %v533_v37 }
 0x1d9   : > { %v789_v40 = vpop.f32.mrf.mxu2 }
 0x1da   : > { %v854_v42 = vpop.f32.mrf.mxu3  ;;  %921 = vst [vmem:[#allocation2 + $0x10] sm:$0xff] %v889_v43 }
 0x1db   : > { %v855_v44 = vadd.f32 %v854_v42, %v789_v40 }
 0x1dd   : > { %v890_v45 = vadd.f32 %v855_v44, %v534_v41  ;;  %v662_v46 = vpop.f32.mrf.mxu0  ;;  %v727_v48 = vpop.f32.mrf.mxu1 }
 0x1de   : > { %v728_v49 = vadd.f32 %v727_v48, %v662_v46 }
 0x1df   : > { %922 = vst [vmem:[#allocation2 + $0x28] sm:$0xff] %v890_v45 }
 0x1e0   : > { %v891_v53 = vadd.f32 %v728_v49, %v535_v47 }
 0x1e1   : > { %v792_v50 = vpop.f32.mrf.mxu2 }
 0x1e2   : > { %v857_v52 = vpop.f32.mrf.mxu3  ;;  %923 = vst [vmem:[#allocation2 + $0xa0] sm:$0xff] %v891_v53 }
 0x1e3   : > { %v858_v54 = vadd.f32 %v857_v52, %v792_v50 }
 0x1e5   : > { %v892_v55 = vadd.f32 %v858_v54, %v536_v51  ;;  %v665_v56 = vpop.f32.mrf.mxu0  ;;  %v730_v58 = vpop.f32.mrf.mxu1 }
 0x1e6   : > { %v731_v59 = vadd.f32 %v730_v58, %v665_v56 }
 0x1e7   : > { %924 = vst [vmem:[#allocation2 + $0xf8] sm:$0xff] %v892_v55 }
 0x1e8   : > { %v893_v1 = vadd.f32 %v731_v59, %v537_v57 }
 0x1e9   : > { %v795_v60 = vpop.f32.mrf.mxu2 }
 0x1ea   : > { %v860_v0 = vpop.f32.mrf.mxu3  ;;  %925 = vst [vmem:[#allocation2 + $0x20] sm:$0xff] %v893_v1 }
 0x1eb   : > { %v861_v2 = vadd.f32 %v860_v0, %v795_v60  ;;  %929 = sbr.rel (%p1679_p10) target bundleno = 722 (0x2d2), region = 72 }
 0x1ed   : > { %v894_v3 = vadd.f32 %v861_v2, %v538_v61 }
 0x1ef   : > { %926 = vst [vmem:[#allocation2 + $0x98] sm:$0xff] %v894_v3 }
 0x1f0   : > { %v947_v34 = vld [vmem:[%s2913_s20 + $0x78] sm:$0xff]  ;;  %v946_v36 = vld [vmem:[%s2913_s20 + $0x70] sm:$0xff]  ;;  %v945_v38 = vld [vmem:[%s2913_s20 + $0x68] sm:$0xff] }
 0x1f1   : > { %v963_v35 = vld [vmem:[%s2913_s20 + $0xf8] sm:$0xff]  ;;  %1693 = vmatpush.msra.mxu2 %v947_v34  ;;  %v962_v37 = vld [vmem:[%s2913_s20 + $0xf0] sm:$0xff]  ;;  %v961_v39 = vld [vmem:[%s2913_s20 + $0xe8] sm:$0xff]  ;;  %980 = vmatpush.msra.mxu0 %v947_v34 }
 0x1f2   : > { %1709 = vmatpush.msra.mxu3 %v963_v35  ;;  %1045 = vmatpush.msra.mxu1 %v963_v35  ;;  %v944_v40 = vld [vmem:[%s2913_s20 + $0x60] sm:$0xff]  ;;  %v943_v42 = vld [vmem:[%s2913_s20 + $0x58] sm:$0xff]  ;;  %v942_v44 = vld [vmem:[%s2913_s20 + $0x50] sm:$0xff] }
 0x1f3   : > { %1694 = vmatpush.msra.mxu2 %v946_v36  ;;  %v960_v41 = vld [vmem:[%s2913_s20 + $0xe0] sm:$0xff]  ;;  %981 = vmatpush.msra.mxu0 %v946_v36  ;;  %v959_v43 = vld [vmem:[%s2913_s20 + $0xd8] sm:$0xff]  ;;  %v958_v45 = vld [vmem:[%s2913_s20 + $0xd0] sm:$0xff] }
 0x1f4   : > { %1710 = vmatpush.msra.mxu3 %v962_v37  ;;  %1046 = vmatpush.msra.mxu1 %v962_v37  ;;  %v941_v46 = vld [vmem:[%s2913_s20 + $0x48] sm:$0xff]  ;;  %v940_v48 = vld [vmem:[%s2913_s20 + $0x40] sm:$0xff]  ;;  %v939_v50 = vld [vmem:[%s2913_s20 + $0x38] sm:$0xff] }
 0x1f5   : > { %1695 = vmatpush.msra.mxu2 %v945_v38  ;;  %982 = vmatpush.msra.mxu0 %v945_v38  ;;  %v957_v47 = vld [vmem:[%s2913_s20 + $0xc8] sm:$0xff]  ;;  %v956_v49 = vld [vmem:[%s2913_s20 + $0xc0] sm:$0xff]  ;;  %v955_v51 = vld [vmem:[%s2913_s20 + $0xb8] sm:$0xff] }
 0x1f6   : > { %1711 = vmatpush.msra.mxu3 %v961_v39  ;;  %1047 = vmatpush.msra.mxu1 %v961_v39  ;;  %v938_v52 = vld [vmem:[%s2913_s20 + $0x30] sm:$0xff]  ;;  %v937_v54 = vld [vmem:[%s2913_s20 + $0x28] sm:$0xff]  ;;  %v936_v56 = vld [vmem:[%s2913_s20 + $0x20] sm:$0xff] }
 0x1f7   : > { %1696 = vmatpush.msra.mxu2 %v944_v40  ;;  %983 = vmatpush.msra.mxu0 %v944_v40  ;;  %v954_v53 = vld [vmem:[%s2913_s20 + $0xb0] sm:$0xff]  ;;  %v953_v55 = vld [vmem:[%s2913_s20 + $0xa8] sm:$0xff]  ;;  %v952_v57 = vld [vmem:[%s2913_s20 + $0xa0] sm:$0xff] }
 0x1f8   : > { %1712 = vmatpush.msra.mxu3 %v960_v41  ;;  %1048 = vmatpush.msra.mxu1 %v960_v41  ;;  %v935_v58 = vld [vmem:[%s2913_s20 + $0x18] sm:$0xff]  ;;  %v934_v60 = vld [vmem:[%s2913_s20 + $0x10] sm:$0xff]  ;;  %v933_v0 = vld [vmem:[%s2913_s20 + $0x8] sm:$0xff] }
 0x1f9   : > { %1697 = vmatpush.msra.mxu2 %v943_v42  ;;  %984 = vmatpush.msra.mxu0 %v943_v42  ;;  %v951_v59 = vld [vmem:[%s2913_s20 + $0x98] sm:$0xff]  ;;  %v950_v61 = vld [vmem:[%s2913_s20 + $0x90] sm:$0xff]  ;;  %v949_v1 = vld [vmem:[%s2913_s20 + $0x88] sm:$0xff] }
 0x1fa   : > { %1713 = vmatpush.msra.mxu3 %v959_v43  ;;  %1049 = vmatpush.msra.mxu1 %v959_v43  ;;  %v932_v2 = vld [vmem:[%s2913_s20] sm:$0xff]  ;;  %v968_v43 = vld [vmem:[#allocation3 + $0x8] sm:$0xff] }
 0x1fb   : > { %1698 = vmatpush.msra.mxu2 %v942_v44  ;;  %985 = vmatpush.msra.mxu0 %v942_v44  ;;  %v948_v3 = vld [vmem:[%s2913_s20 + $0x80] sm:$0xff] }
 0x1fc   : > { %1714 = vmatpush.msra.mxu3 %v958_v45  ;;  %1050 = vmatpush.msra.mxu1 %v958_v45  ;;  %v975_v38 = vld [vmem:[#allocation3 + $0x20] sm:$0xff] }
 0x1fd   : > { %1699 = vmatpush.msra.mxu2 %v941_v46  ;;  %986 = vmatpush.msra.mxu0 %v941_v46 }
 0x1fe   : > { %1715 = vmatpush.msra.mxu3 %v957_v47  ;;  %1051 = vmatpush.msra.mxu1 %v957_v47 }
 0x1ff   : > { %1700 = vmatpush.msra.mxu2 %v940_v48  ;;  %987 = vmatpush.msra.mxu0 %v940_v48  ;;  %v976_v48 = vld [vmem:[#allocation3 + $0x10] sm:$0xff] }
 0x200   : > { %1716 = vmatpush.msra.mxu3 %v956_v49  ;;  %1052 = vmatpush.msra.mxu1 %v956_v49 }
 0x201   : > { %1701 = vmatpush.msra.mxu2 %v939_v50  ;;  %988 = vmatpush.msra.mxu0 %v939_v50 }
 0x202   : > { %1717 = vmatpush.msra.mxu3 %v955_v51  ;;  %1053 = vmatpush.msra.mxu1 %v955_v51 }
 0x203   : > { %1702 = vmatpush.msra.mxu2 %v938_v52  ;;  %989 = vmatpush.msra.mxu0 %v938_v52 }
 0x204   : > { %1718 = vmatpush.msra.mxu3 %v954_v53  ;;  %1054 = vmatpush.msra.mxu1 %v954_v53  ;;  %v969_v53 = vld [vmem:[#allocation3 + $0x50] sm:$0xff] }
 0x205   : > { %1703 = vmatpush.msra.mxu2 %v937_v54  ;;  %990 = vmatpush.msra.mxu0 %v937_v54 }
 0x206   : > { %1719 = vmatpush.msra.mxu3 %v953_v55  ;;  %1055 = vmatpush.msra.mxu1 %v953_v55 }
 0x207   : > { %1704 = vmatpush.msra.mxu2 %v936_v56  ;;  %991 = vmatpush.msra.mxu0 %v936_v56 }
 0x208   : > { %1720 = vmatpush.msra.mxu3 %v952_v57  ;;  %1056 = vmatpush.msra.mxu1 %v952_v57 }
 0x209   : > { %1705 = vmatpush.msra.mxu2 %v935_v58  ;;  %992 = vmatpush.msra.mxu0 %v935_v58  ;;  %v977_v58 = vld [vmem:[#allocation3 + $0x30] sm:$0xff] }
 0x20a   : > { %1721 = vmatpush.msra.mxu3 %v951_v59  ;;  %1057 = vmatpush.msra.mxu1 %v951_v59 }
 0x20b   : > { %1706 = vmatpush.msra.mxu2 %v934_v60  ;;  %993 = vmatpush.msra.mxu0 %v934_v60 }
 0x20c   : > { %1722 = vmatpush.msra.mxu3 %v950_v61  ;;  %1058 = vmatpush.msra.mxu1 %v950_v61 }
 0x20d   : > { %1707 = vmatpush.msra.mxu2 %v933_v0  ;;  %994 = vmatpush.msra.mxu0 %v933_v0 }
 0x20e   : > { %1723 = vmatpush.msra.mxu3 %v949_v1  ;;  %1059 = vmatpush.msra.mxu1 %v949_v1  ;;  %v970_v1 = vld [vmem:[#allocation3 + $0x40] sm:$0xff] }
 0x20f   : > { %1708 = vmatpush.msra.mxu2 %v932_v2  ;;  %995 = vmatpush.msra.mxu0 %v932_v2 }
 0x210   : > { %1724 = vmatpush.msra.mxu3 %v948_v3  ;;  %1020 = vmatmul.f32.vlgmr.msra.gmra.mxu2 %v2832_v18 }
 0x211   : > { %1085 = vmatmul.f32.vlgmr.msra.gmra.mxu3 %v2835_v19  ;;  %1060 = vmatpush.msra.mxu1 %v948_v3  ;;  %v973_v19 = vld [vmem:[#allocation3 + $0x60] sm:$0xff] }
 0x212   : > { %996 = vmatmul.f32.vlgmr.msra.gmra.mxu0 %v2748_v62  ;;  %1061 = vmatmul.f32.vlgmr.msra.gmra.mxu1 %v2751_v63  ;;  %v964_v63 = vld [vmem:[#allocation3] sm:$0xff] }
 0x218   : > { %1023 = vmatmul.f32.gmra.mxu2 %v2842_v20 }
 0x219   : > { %1088 = vmatmul.f32.gmra.mxu3 %v2845_v21 }
 0x21a   : > { %999 = vmatmul.f32.gmra.mxu0 %v2762_v4  ;;  %1064 = vmatmul.f32.gmra.mxu1 %v2765_v5 }
 0x220   : > { %1026 = vmatmul.f32.gmra.mxu2 %v2852_v22 }
 0x221   : > { %1091 = vmatmul.f32.gmra.mxu3 %v2855_v23  ;;  %v966_v23 = vld [vmem:[#allocation3 + $0x68] sm:$0xff] }
 0x222   : > { %1002 = vmatmul.f32.gmra.mxu0 %v2772_v6  ;;  %1067 = vmatmul.f32.gmra.mxu1 %v2775_v7 }
 0x228   : > { %1029 = vmatmul.f32.gmra.mxu2 %v2862_v24 }
 0x229   : > { %1094 = vmatmul.f32.gmra.mxu3 %v2865_v25 }
 0x22a   : > { %1005 = vmatmul.f32.gmra.mxu0 %v2782_v8  ;;  %1070 = vmatmul.f32.gmra.mxu1 %v2785_v9  ;;  %v972_v8 = vld [vmem:[#allocation3 + $0x70] sm:$0xff] }
 0x230   : > { %1032 = vmatmul.f32.gmra.mxu2 %v2872_v26 }
 0x231   : > { %1097 = vmatmul.f32.gmra.mxu3 %v2875_v27 }
 0x232   : > { %1008 = vmatmul.f32.gmra.mxu0 %v2792_v10  ;;  %1073 = vmatmul.f32.gmra.mxu1 %v2795_v11 }
 0x238   : > { %1035 = vmatmul.f32.gmra.mxu2 %v2882_v28  ;;  %v974_v28 = vld [vmem:[#allocation3 + $0x18] sm:$0xff] }
 0x239   : > { %1100 = vmatmul.f32.gmra.mxu3 %v2885_v29 }
 0x23a   : > { %1011 = vmatmul.f32.gmra.mxu0 %v2802_v12  ;;  %1076 = vmatmul.f32.gmra.mxu1 %v2805_v13  ;;  %v965_v13 = vld [vmem:[#allocation3 + $0x48] sm:$0xff] }
 0x240   : > { %1038 = vmatmul.f32.gmra.mxu2 %v2892_v30 }
 0x241   : > { %1103 = vmatmul.f32.gmra.mxu3 %v2895_v31 }
 0x242   : > { %1014 = vmatmul.f32.gmra.mxu0 %v2812_v14  ;;  %1079 = vmatmul.f32.gmra.mxu1 %v2815_v15 }
 0x248   : > { %1041 = vmatmul.f32.gmra.mxu2 %v2902_v32 }
 0x249   : > { %1106 = vmatmul.f32.gmra.mxu3 %v2905_v33  ;;  %v967_v33 = vld [vmem:[#allocation3 + $0x78] sm:$0xff] }
 0x24a   : > { %1017 = vmatmul.f32.gmra.mxu0 %v2822_v16  ;;  %1082 = vmatmul.f32.gmra.mxu1 %v2825_v17 }
 0x28f   : > { %v997_v62 = vpop.f32.mrf.mxu0  ;;  %v1062_v4 = vpop.f32.mrf.mxu1 }
 0x290   : > { %v1063_v5 = vadd.f32 %v1062_v4, %v997_v62  ;;  %v978_v4 = vld [vmem:[#allocation3 + $0x28] sm:$0xff] }
 0x292   : > { %v1110_v6 = vadd.f32 %v1063_v5, %v964_v63 }
 0x293   : > { %v1021_v7 = vpop.f32.mrf.mxu2 }
 0x294   : > { %v1086_v9 = vpop.f32.mrf.mxu3  ;;  %1126 = vst [vmem:[#allocation3] sm:$0xff] %v1110_v6 }
 0x295   : > { %v1087_v10 = vadd.f32 %v1086_v9, %v1021_v7  ;;  %v971_v9 = vld [vmem:[#allocation3 + $0x38] sm:$0xff] }
 0x297   : > { %v1118_v11 = vadd.f32 %v1087_v10, %v972_v8  ;;  %v1000_v12 = vpop.f32.mrf.mxu0  ;;  %v1065_v14 = vpop.f32.mrf.mxu1 }
 0x298   : > { %v1066_v15 = vadd.f32 %v1065_v14, %v1000_v12  ;;  %v979_v14 = vld [vmem:[#allocation3 + $0x58] sm:$0xff] }
 0x299   : > { %1134 = vst [vmem:[#allocation3 + $0x70] sm:$0xff] %v1118_v11 }
 0x29a   : > { %v1111_v18 = vadd.f32 %v1066_v15, %v965_v13 }
 0x29b   : > { %v1024_v16 = vpop.f32.mrf.mxu2 }
 0x29c   : > { %v1089_v17 = vpop.f32.mrf.mxu3  ;;  %1127 = vst [vmem:[#allocation3 + $0x48] sm:$0xff] %v1111_v18 }
 0x29d   : > { %v1090_v20 = vadd.f32 %v1089_v17, %v1024_v16 }
 0x29f   : > { %v1119_v21 = vadd.f32 %v1090_v20, %v973_v19  ;;  %v1003_v22 = vpop.f32.mrf.mxu0  ;;  %v1068_v24 = vpop.f32.mrf.mxu1 }
 0x2a0   : > { %v1069_v25 = vadd.f32 %v1068_v24, %v1003_v22 }
 0x2a1   : > { %1135 = vst [vmem:[#allocation3 + $0x60] sm:$0xff] %v1119_v21 }
 0x2a2   : > { %v1112_v26 = vadd.f32 %v1069_v25, %v966_v23 }
 0x2a3   : > { %v1027_v27 = vpop.f32.mrf.mxu2 }
 0x2a4   : > { %v1092_v29 = vpop.f32.mrf.mxu3  ;;  %1128 = vst [vmem:[#allocation3 + $0x68] sm:$0xff] %v1112_v26 }
 0x2a5   : > { %v1093_v30 = vadd.f32 %v1092_v29, %v1027_v27 }
 0x2a7   : > { %v1120_v31 = vadd.f32 %v1093_v30, %v974_v28  ;;  %v1006_v32 = vpop.f32.mrf.mxu0  ;;  %v1071_v34 = vpop.f32.mrf.mxu1 }
 0x2a8   : > { %v1072_v35 = vadd.f32 %v1071_v34, %v1006_v32 }
 0x2a9   : > { %1136 = vst [vmem:[#allocation3 + $0x18] sm:$0xff] %v1120_v31 }
 0x2aa   : > { %v1113_v36 = vadd.f32 %v1072_v35, %v967_v33 }
 0x2ab   : > { %v1030_v37 = vpop.f32.mrf.mxu2 }
 0x2ac   : > { %v1095_v39 = vpop.f32.mrf.mxu3  ;;  %1129 = vst [vmem:[#allocation3 + $0x78] sm:$0xff] %v1113_v36 }
 0x2ad   : > { %v1096_v40 = vadd.f32 %v1095_v39, %v1030_v37 }
 0x2af   : > { %v1121_v41 = vadd.f32 %v1096_v40, %v975_v38  ;;  %v1009_v42 = vpop.f32.mrf.mxu0  ;;  %v1074_v44 = vpop.f32.mrf.mxu1 }
 0x2b0   : > { %v1075_v45 = vadd.f32 %v1074_v44, %v1009_v42 }
 0x2b1   : > { %1137 = vst [vmem:[#allocation3 + $0x20] sm:$0xff] %v1121_v41 }
 0x2b2   : > { %v1114_v46 = vadd.f32 %v1075_v45, %v968_v43 }
 0x2b3   : > { %v1033_v47 = vpop.f32.mrf.mxu2 }
 0x2b4   : > { %v1098_v49 = vpop.f32.mrf.mxu3  ;;  %1130 = vst [vmem:[#allocation3 + $0x8] sm:$0xff] %v1114_v46 }
 0x2b5   : > { %v1099_v50 = vadd.f32 %v1098_v49, %v1033_v47 }
 0x2b7   : > { %v1122_v51 = vadd.f32 %v1099_v50, %v976_v48  ;;  %v1012_v52 = vpop.f32.mrf.mxu0  ;;  %v1077_v54 = vpop.f32.mrf.mxu1 }
 0x2b8   : > { %v1078_v55 = vadd.f32 %v1077_v54, %v1012_v52 }
 0x2b9   : > { %1138 = vst [vmem:[#allocation3 + $0x10] sm:$0xff] %v1122_v51 }
 0x2ba   : > { %v1115_v56 = vadd.f32 %v1078_v55, %v969_v53 }
 0x2bb   : > { %v1036_v57 = vpop.f32.mrf.mxu2 }
 0x2bc   : > { %v1101_v59 = vpop.f32.mrf.mxu3  ;;  %1131 = vst [vmem:[#allocation3 + $0x50] sm:$0xff] %v1115_v56 }
 0x2bd   : > { %v1102_v60 = vadd.f32 %v1101_v59, %v1036_v57 }
 0x2bf   : > { %v1123_v61 = vadd.f32 %v1102_v60, %v977_v58  ;;  %v1015_v0 = vpop.f32.mrf.mxu0  ;;  %v1080_v2 = vpop.f32.mrf.mxu1 }
 0x2c0   : > { %v1081_v3 = vadd.f32 %v1080_v2, %v1015_v0 }
 0x2c1   : > { %1139 = vst [vmem:[#allocation3 + $0x30] sm:$0xff] %v1123_v61 }
 0x2c2   : > { %v1116_v62 = vadd.f32 %v1081_v3, %v970_v1 }
 0x2c3   : > { %v1039_v63 = vpop.f32.mrf.mxu2 }
 0x2c4   : > { %v1104_v5 = vpop.f32.mrf.mxu3  ;;  %1132 = vst [vmem:[#allocation3 + $0x40] sm:$0xff] %v1116_v62 }
 0x2c5   : > { %v1105_v6 = vadd.f32 %v1104_v5, %v1039_v63 }
 0x2c7   : > { %v1124_v7 = vadd.f32 %v1105_v6, %v978_v4  ;;  %v1018_v8 = vpop.f32.mrf.mxu0  ;;  %v1083_v10 = vpop.f32.mrf.mxu1 }
 0x2c8   : > { %v1084_v11 = vadd.f32 %v1083_v10, %v1018_v8 }
 0x2c9   : > { %1140 = vst [vmem:[#allocation3 + $0x28] sm:$0xff] %v1124_v7 }
 0x2ca   : > { %v1117_v12 = vadd.f32 %v1084_v11, %v971_v9 }
 0x2cb   : > { %v1042_v13 = vpop.f32.mrf.mxu2 }
 0x2cc   : > { %v1107_v15 = vpop.f32.mrf.mxu3  ;;  %1133 = vst [vmem:[#allocation3 + $0x38] sm:$0xff] %v1117_v12 }
 0x2cd   : > { %v1108_v18 = vadd.f32 %v1107_v15, %v1042_v13 }
 0x2cf   : > { %v1125_v16 = vadd.f32 %v1108_v18, %v979_v14 }
 0x2d1   : > { %1141 = vst [vmem:[#allocation3 + $0x58] sm:$0xff] %v1125_v16 }
 0x2d2 PF: > { %s3262_s26 = sld [smem:[#allocation28_spill]] }
 0x2d8   : > { %p1681_p8 = scmp.ne.s32.totalorder %s3262_s26, 1 }
 0x2da   : > { %1145 = sbr.rel (%p1681_p8) target bundleno = 959 (0x3bf), region = 76 }
 0x2df   : > { %v1192_v19 = vld [vmem:[%s2671_s0 + $0xf0] sm:$0xff]  ;;  %v1193_v17 = vld [vmem:[%s2671_s0 + $0xf8] sm:$0xff]  ;;  %v1190_v20 = vld [vmem:[%s2671_s0 + $0xe0] sm:$0xff] }
 0x2e0   : > { %1725 = vmatpush.msra.mxu2 %v1192_v19  ;;  %1741 = vmatpush.msra.mxu3 %v1193_v17  ;;  %v1191_v21 = vld [vmem:[%s2671_s0 + $0xe8] sm:$0xff]  ;;  %v1188_v22 = vld [vmem:[%s2671_s0 + $0xd0] sm:$0xff]  ;;  %v1189_v23 = vld [vmem:[%s2671_s0 + $0xd8] sm:$0xff] }
 0x2e1   : > { %1194 = vmatpush.msra.mxu0 %v1192_v19  ;;  %1259 = vmatpush.msra.mxu1 %v1193_v17  ;;  %v1186_v24 = vld [vmem:[%s2671_s0 + $0xc0] sm:$0xff]  ;;  %v1187_v25 = vld [vmem:[%s2671_s0 + $0xc8] sm:$0xff]  ;;  %v1184_v26 = vld [vmem:[%s2671_s0 + $0xb0] sm:$0xff] }
 0x2e2   : > { %1726 = vmatpush.msra.mxu2 %v1190_v20  ;;  %1742 = vmatpush.msra.mxu3 %v1191_v21  ;;  %v1185_v27 = vld [vmem:[%s2671_s0 + $0xb8] sm:$0xff]  ;;  %v1182_v28 = vld [vmem:[%s2671_s0 + $0xa0] sm:$0xff]  ;;  %v1183_v29 = vld [vmem:[%s2671_s0 + $0xa8] sm:$0xff] }
 0x2e3   : > { %1195 = vmatpush.msra.mxu0 %v1190_v20  ;;  %1260 = vmatpush.msra.mxu1 %v1191_v21  ;;  %v1180_v30 = vld [vmem:[%s2671_s0 + $0x90] sm:$0xff]  ;;  %v1181_v31 = vld [vmem:[%s2671_s0 + $0x98] sm:$0xff]  ;;  %v1178_v32 = vld [vmem:[%s2671_s0 + $0x80] sm:$0xff] }
 0x2e4   : > { %1727 = vmatpush.msra.mxu2 %v1188_v22  ;;  %1743 = vmatpush.msra.mxu3 %v1189_v23  ;;  %v1179_v33 = vld [vmem:[%s2671_s0 + $0x88] sm:$0xff]  ;;  %v1176_v34 = vld [vmem:[%s2671_s0 + $0x70] sm:$0xff]  ;;  %v1177_v35 = vld [vmem:[%s2671_s0 + $0x78] sm:$0xff] }
 0x2e5   : > { %1196 = vmatpush.msra.mxu0 %v1188_v22  ;;  %1261 = vmatpush.msra.mxu1 %v1189_v23  ;;  %v1174_v36 = vld [vmem:[%s2671_s0 + $0x60] sm:$0xff]  ;;  %v1175_v37 = vld [vmem:[%s2671_s0 + $0x68] sm:$0xff]  ;;  %v1172_v38 = vld [vmem:[%s2671_s0 + $0x50] sm:$0xff] }
 0x2e6   : > { %1728 = vmatpush.msra.mxu2 %v1186_v24  ;;  %1744 = vmatpush.msra.mxu3 %v1187_v25  ;;  %v1173_v39 = vld [vmem:[%s2671_s0 + $0x58] sm:$0xff]  ;;  %v1170_v40 = vld [vmem:[%s2671_s0 + $0x40] sm:$0xff]  ;;  %v1171_v41 = vld [vmem:[%s2671_s0 + $0x48] sm:$0xff] }
 0x2e7   : > { %1197 = vmatpush.msra.mxu0 %v1186_v24  ;;  %1262 = vmatpush.msra.mxu1 %v1187_v25  ;;  %v1168_v42 = vld [vmem:[%s2671_s0 + $0x30] sm:$0xff]  ;;  %v1169_v43 = vld [vmem:[%s2671_s0 + $0x38] sm:$0xff]  ;;  %v1166_v44 = vld [vmem:[%s2671_s0 + $0x20] sm:$0xff] }
 0x2e8   : > { %1729 = vmatpush.msra.mxu2 %v1184_v26  ;;  %1745 = vmatpush.msra.mxu3 %v1185_v27  ;;  %v1167_v45 = vld [vmem:[%s2671_s0 + $0x28] sm:$0xff]  ;;  %v1164_v46 = vld [vmem:[%s2671_s0 + $0x10] sm:$0xff]  ;;  %v1165_v47 = vld [vmem:[%s2671_s0 + $0x18] sm:$0xff] }
 0x2e9   : > { %1198 = vmatpush.msra.mxu0 %v1184_v26  ;;  %1263 = vmatpush.msra.mxu1 %v1185_v27  ;;  %v1162_v48 = vld [vmem:[%s2671_s0] sm:$0xff]  ;;  %v1163_v49 = vld [vmem:[%s2671_s0 + $0x8] sm:$0xff]  ;;  %v1156_v54 = vld [vmem:[#allocation3 + $0x18] sm:$0xff] }
 0x2ea   : > { %1730 = vmatpush.msra.mxu2 %v1182_v28  ;;  %1746 = vmatpush.msra.mxu3 %v1183_v29  ;;  %v1154_v50 = vld [vmem:[#allocation3 + $0x70] sm:$0xff]  ;;  %v1146_v51 = vld [vmem:[#allocation3] sm:$0xff]  ;;  %v1147_v53 = vld [vmem:[#allocation3 + $0x48] sm:$0xff] }
 0x2eb   : > { %1199 = vmatpush.msra.mxu0 %v1182_v28  ;;  %1264 = vmatpush.msra.mxu1 %v1183_v29  ;;  %v1155_v52 = vld [vmem:[#allocation3 + $0x60] sm:$0xff]  ;;  %v1148_v55 = vld [vmem:[#allocation3 + $0x68] sm:$0xff]  ;;  %v1149_v57 = vld [vmem:[#allocation3 + $0x78] sm:$0xff] }
 0x2ec   : > { %1731 = vmatpush.msra.mxu2 %v1180_v30  ;;  %1747 = vmatpush.msra.mxu3 %v1181_v31  ;;  %v1157_v56 = vld [vmem:[#allocation3 + $0x20] sm:$0xff]  ;;  %v1158_v58 = vld [vmem:[#allocation3 + $0x10] sm:$0xff]  ;;  %v1150_v59 = vld [vmem:[#allocation3 + $0x8] sm:$0xff] }
 0x2ed   : > { %1200 = vmatpush.msra.mxu0 %v1180_v30  ;;  %1265 = vmatpush.msra.mxu1 %v1181_v31  ;;  %v1159_v60 = vld [vmem:[#allocation3 + $0x30] sm:$0xff]  ;;  %v1160_v0 = vld [vmem:[#allocation3 + $0x28] sm:$0xff]  ;;  %v1152_v1 = vld [vmem:[#allocation3 + $0x40] sm:$0xff] }
 0x2ee   : > { %1732 = vmatpush.msra.mxu2 %v1178_v32  ;;  %1748 = vmatpush.msra.mxu3 %v1179_v33  ;;  %v1151_v61 = vld [vmem:[#allocation3 + $0x50] sm:$0xff]  ;;  %v1161_v2 = vld [vmem:[#allocation3 + $0x58] sm:$0xff]  ;;  %v1356_v62 = vld [vmem:[%s352_s2] sm:$0x3] }
 0x2ef   : > { %1201 = vmatpush.msra.mxu0 %v1178_v32  ;;  %1266 = vmatpush.msra.mxu1 %v1179_v33  ;;  %v1153_v3 = vld [vmem:[#allocation3 + $0x38] sm:$0xff]  ;;  %v3014_v63 = vperm.slane %v1356_v62, 0  ;;  %v3016_v4 = vperm.slane %v1356_v62, 1  ;;  %v1324_v5 = vld [vmem:[#allocation2 + $0xb0] sm:$0xff]  ;;  %v1325_v6 = vld [vmem:[#allocation2] sm:$0xff] }
 0x2f0   : > { %1733 = vmatpush.msra.mxu2 %v1176_v34  ;;  %1749 = vmatpush.msra.mxu3 %v1177_v35  ;;  %v1340_v9 = vld [vmem:[#allocation2 + $0x38] sm:$0xff]  ;;  %v1342_v25 = vld [vmem:[#allocation2 + $0x40] sm:$0xff]  ;;  %v1343_v26 = vld [vmem:[#allocation2 + $0xc8] sm:$0xff] }
 0x2f1   : > { %1202 = vmatpush.msra.mxu0 %v1176_v34  ;;  %1267 = vmatpush.msra.mxu1 %v1177_v35  ;;  %v1362_v7 = vadd.f32 %v3014_v63, %v1324_v5  ;;  %v1363_v8 = vadd.f32 %v3016_v4, %v1325_v6  ;;  %v1341_v10 = vld [vmem:[#allocation2 + $0x58] sm:$0xff]  ;;  %v1378_v14 = vadd.f32 %v3014_v63, %v1340_v9  ;;  %v1328_v33 = vld [vmem:[#allocation2 + $0x50] sm:$0xff]  ;;  %v1329_v34 = vld [vmem:[#allocation2 + $0x68] sm:$0xff] }
 0x2f2   : > { %1734 = vmatpush.msra.mxu2 %v1174_v36  ;;  %1750 = vmatpush.msra.mxu3 %v1175_v37  ;;  %v1379_v18 = vadd.f32 %v3016_v4, %v1341_v10  ;;  %v1326_v16 = vld [vmem:[#allocation2 + $0xd8] sm:$0xff]  ;;  %v1380_v30 = vadd.f32 %v3014_v63, %v1342_v25  ;;  %v1381_v32 = vadd.f32 %v3016_v4, %v1343_v26  ;;  %v1333_v62 = vld [vmem:[#allocation2 + $0x88] sm:$0xff] }
 0x2f3   : > { %1203 = vmatpush.msra.mxu0 %v1174_v36  ;;  %1268 = vmatpush.msra.mxu1 %v1175_v37  ;;  %v1327_v19 = vld [vmem:[#allocation2 + $0x18] sm:$0xff]  ;;  %v1364_v23 = vadd.f32 %v3014_v63, %v1326_v16  ;;  %v1371_v10 = vadd.f32 %v3016_v4, %v1333_v62 }
 0x2f4   : > { %1735 = vmatpush.msra.mxu2 %v1172_v38  ;;  %1751 = vmatpush.msra.mxu3 %v1173_v39  ;;  %v1365_v24 = vadd.f32 %v3016_v4, %v1327_v19 }
 0x2f5   : > { %1204 = vmatpush.msra.mxu0 %v1172_v38  ;;  %1269 = vmatpush.msra.mxu1 %v1173_v39  ;;  %v1366_v39 = vadd.f32 %v3014_v63, %v1328_v33 }
 0x2f6   : > { %1736 = vmatpush.msra.mxu2 %v1170_v40  ;;  %1752 = vmatpush.msra.mxu3 %v1171_v41 }
 0x2f7   : > { %1205 = vmatpush.msra.mxu0 %v1170_v40  ;;  %1270 = vmatpush.msra.mxu1 %v1171_v41  ;;  %v1367_v40 = vadd.f32 %v3016_v4, %v1329_v34  ;;  %v1344_v41 = vld [vmem:[#allocation2 + $0xe0] sm:$0xff] }
 0x2f8   : > { %1737 = vmatpush.msra.mxu2 %v1168_v42  ;;  %1753 = vmatpush.msra.mxu3 %v1169_v43 }
 0x2f9   : > { %1206 = vmatpush.msra.mxu0 %v1168_v42  ;;  %1271 = vmatpush.msra.mxu1 %v1169_v43  ;;  %v1345_v42 = vld [vmem:[#allocation2 + $0x90] sm:$0xff] }
 0x2fa   : > { %1738 = vmatpush.msra.mxu2 %v1166_v44  ;;  %1754 = vmatpush.msra.mxu3 %v1167_v45 }
 0x2fb   : > { %1207 = vmatpush.msra.mxu0 %v1166_v44  ;;  %1272 = vmatpush.msra.mxu1 %v1167_v45 }
 0x2fc   : > { %1739 = vmatpush.msra.mxu2 %v1164_v46  ;;  %1755 = vmatpush.msra.mxu3 %v1165_v47 }
 0x2fd   : > { %1208 = vmatpush.msra.mxu0 %v1164_v46  ;;  %1273 = vmatpush.msra.mxu1 %v1165_v47  ;;  %v1382_v46 = vadd.f32 %v3014_v63, %v1344_v41 }
 0x2fe   : > { %1740 = vmatpush.msra.mxu2 %v1162_v48  ;;  %1756 = vmatpush.msra.mxu3 %v1163_v49 }
 0x2ff   : > { %1234 = vmatmul.f32.vlgmr.msra.gmra.mxu2 %v1154_v50  ;;  %1299 = vmatmul.f32.vlgmr.msra.gmra.mxu3 %v1154_v50  ;;  %v1331_v50 = vld [vmem:[#allocation2 + $0x48] sm:$0xff] }
 0x300   : > { %1209 = vmatpush.msra.mxu0 %v1162_v48  ;;  %1274 = vmatpush.msra.mxu1 %v1163_v49  ;;  %v1383_v48 = vadd.f32 %v3016_v4, %v1345_v42  ;;  %v1330_v49 = vld [vmem:[#allocation2 + $0x30] sm:$0xff] }
 0x301   : > { %1210 = vmatmul.f32.vlgmr.msra.gmra.mxu0 %v1146_v51  ;;  %1275 = vmatmul.f32.vlgmr.msra.gmra.mxu1 %v1146_v51 }
 0x307   : > { %1237 = vmatmul.f32.gmra.mxu2 %v1155_v52  ;;  %1302 = vmatmul.f32.gmra.mxu3 %v1155_v52 }
 0x309   : > { %1213 = vmatmul.f32.gmra.mxu0 %v1147_v53  ;;  %1278 = vmatmul.f32.gmra.mxu1 %v1147_v53 }
 0x30f   : > { %1240 = vmatmul.f32.gmra.mxu2 %v1156_v54  ;;  %1305 = vmatmul.f32.gmra.mxu3 %v1156_v54 }
 0x311   : > { %1216 = vmatmul.f32.gmra.mxu0 %v1148_v55  ;;  %1281 = vmatmul.f32.gmra.mxu1 %v1148_v55  ;;  %v1368_v55 = vadd.f32 %v3014_v63, %v1330_v49 }
 0x317   : > { %1243 = vmatmul.f32.gmra.mxu2 %v1157_v56  ;;  %1308 = vmatmul.f32.gmra.mxu3 %v1157_v56  ;;  %v1369_v56 = vadd.f32 %v3016_v4, %v1331_v50 }
 0x319   : > { %1219 = vmatmul.f32.gmra.mxu0 %v1149_v57  ;;  %1284 = vmatmul.f32.gmra.mxu1 %v1149_v57  ;;  %v1346_v57 = vld [vmem:[#allocation2 + $0x70] sm:$0xff] }
 0x31f   : > { %1246 = vmatmul.f32.gmra.mxu2 %v1158_v58  ;;  %1311 = vmatmul.f32.gmra.mxu3 %v1158_v58  ;;  %v1347_v58 = vld [vmem:[#allocation2 + $0xc0] sm:$0xff] }
 0x321   : > { %1222 = vmatmul.f32.gmra.mxu0 %v1150_v59  ;;  %1287 = vmatmul.f32.gmra.mxu1 %v1150_v59 }
 0x327   : > { %1249 = vmatmul.f32.gmra.mxu2 %v1159_v60  ;;  %1314 = vmatmul.f32.gmra.mxu3 %v1159_v60 }
 0x329   : > { %1225 = vmatmul.f32.gmra.mxu0 %v1151_v61  ;;  %1290 = vmatmul.f32.gmra.mxu1 %v1151_v61 }
 0x32f   : > { %1252 = vmatmul.f32.gmra.mxu2 %v1160_v0  ;;  %1317 = vmatmul.f32.gmra.mxu3 %v1160_v0  ;;  %v1384_v0 = vadd.f32 %v3014_v63, %v1346_v57 }
 0x331   : > { %1228 = vmatmul.f32.gmra.mxu0 %v1152_v1  ;;  %1293 = vmatmul.f32.gmra.mxu1 %v1152_v1 }
 0x337   : > { %1255 = vmatmul.f32.gmra.mxu2 %v1161_v2  ;;  %1320 = vmatmul.f32.gmra.mxu3 %v1161_v2  ;;  %v1385_v2 = vadd.f32 %v3016_v4, %v1347_v58 }
 0x339   : > { %1231 = vmatmul.f32.gmra.mxu0 %v1153_v3  ;;  %1296 = vmatmul.f32.gmra.mxu1 %v1153_v3  ;;  %v1332_v3 = vld [vmem:[#allocation2 + $0x80] sm:$0xff] }
 0x33a   : > { %v1370_v9 = vadd.f32 %v3014_v63, %v1332_v3 }
 0x37e   : > { %v1211_v11 = vpop.f32.mrf.mxu0  ;;  %v1276_v12 = vpop.f32.mrf.mxu1 }
 0x37f   : > { %v1394_v13 = vadd.f32 %v1362_v7, %v1211_v11  ;;  %v1395_v15 = vadd.f32 %v1363_v8, %v1276_v12  ;;  %v1348_v11 = vld [vmem:[#allocation2 + $0xa8] sm:$0xff]  ;;  %v1349_v12 = vld [vmem:[#allocation2 + $0xd0] sm:$0xff] }
 0x380   : > { %v1387_v19 = vadd.f32 %v3016_v4, %v1349_v12 }
 0x381   : > { %1426 = vst [vmem:[%s2681_s4] sm:$0xff] %v1394_v13 }
 0x382   : > { %v1235_v17 = vpop.f32.mrf.mxu2  ;;  %1427 = vst [vmem:[%s2681_s4 + $0x8] sm:$0xff] %v1395_v15  ;;  %v1300_v20 = vpop.f32.mrf.mxu3 }
 0x383   : > { %v1410_v21 = vadd.f32 %v1378_v14, %v1235_v17  ;;  %v1411_v22 = vadd.f32 %v1379_v18, %v1300_v20  ;;  %v1386_v18 = vadd.f32 %v3014_v63, %v1348_v11  ;;  %v1334_v17 = vld [vmem:[#allocation2 + $0xe8] sm:$0xff]  ;;  %v1335_v20 = vld [vmem:[#allocation2 + $0xb8] sm:$0xff] }
 0x384   : > { %v1372_v25 = vadd.f32 %v3014_v63, %v1334_v17  ;;  %v1373_v26 = vadd.f32 %v3016_v4, %v1335_v20 }
 0x385   : > { %1442 = vst [vmem:[%s2681_s4 + $0x80] sm:$0xff] %v1410_v21 }
 0x386   : > { %1443 = vst [vmem:[%s2681_s4 + $0x88] sm:$0xff] %v1411_v22  ;;  %v1214_v27 = vpop.f32.mrf.mxu0  ;;  %v1279_v28 = vpop.f32.mrf.mxu1 }
 0x387   : > { %v1396_v29 = vadd.f32 %v1364_v23, %v1214_v27  ;;  %v1397_v31 = vadd.f32 %v1365_v24, %v1279_v28  ;;  %v1350_v27 = vld [vmem:[#allocation2 + $0x10] sm:$0xff]  ;;  %v1351_v28 = vld [vmem:[#allocation2 + $0x28] sm:$0xff] }
 0x388   : > { %v1389_v34 = vadd.f32 %v3016_v4, %v1351_v28 }
 0x389   : > { %1428 = vst [vmem:[%s2681_s4 + $0x10] sm:$0xff] %v1396_v29 }
 0x38a   : > { %v1238_v35 = vpop.f32.mrf.mxu2  ;;  %1429 = vst [vmem:[%s2681_s4 + $0x18] sm:$0xff] %v1397_v31  ;;  %v1303_v36 = vpop.f32.mrf.mxu3 }
 0x38b   : > { %v1412_v37 = vadd.f32 %v1380_v30, %v1238_v35  ;;  %v1413_v38 = vadd.f32 %v1381_v32, %v1303_v36  ;;  %v1388_v32 = vadd.f32 %v3014_v63, %v1350_v27  ;;  %v1336_v35 = vld [vmem:[#allocation2 + $0x60] sm:$0xff]  ;;  %v1337_v36 = vld [vmem:[#allocation2 + $0xf0] sm:$0xff] }
 0x38c   : > { %v1374_v41 = vadd.f32 %v3014_v63, %v1336_v35  ;;  %v1375_v42 = vadd.f32 %v3016_v4, %v1337_v36 }
 0x38d   : > { %1444 = vst [vmem:[%s2681_s4 + $0x90] sm:$0xff] %v1412_v37 }
 0x38e   : > { %1445 = vst [vmem:[%s2681_s4 + $0x98] sm:$0xff] %v1413_v38  ;;  %v1217_v43 = vpop.f32.mrf.mxu0  ;;  %v1282_v44 = vpop.f32.mrf.mxu1 }
 0x38f   : > { %v1398_v45 = vadd.f32 %v1366_v39, %v1217_v43  ;;  %v1399_v47 = vadd.f32 %v1367_v40, %v1282_v44  ;;  %v1352_v43 = vld [vmem:[#allocation2 + $0xa0] sm:$0xff]  ;;  %v1353_v44 = vld [vmem:[#allocation2 + $0xf8] sm:$0xff] }
 0x390   : > { %v1391_v50 = vadd.f32 %v3016_v4, %v1353_v44 }
 0x391   : > { %1430 = vst [vmem:[%s2681_s4 + $0x20] sm:$0xff] %v1398_v45 }
 0x392   : > { %v1241_v51 = vpop.f32.mrf.mxu2  ;;  %1431 = vst [vmem:[%s2681_s4 + $0x28] sm:$0xff] %v1399_v47  ;;  %v1306_v52 = vpop.f32.mrf.mxu3 }
 0x393   : > { %v1414_v53 = vadd.f32 %v1382_v46, %v1241_v51  ;;  %v1415_v54 = vadd.f32 %v1383_v48, %v1306_v52  ;;  %v1390_v48 = vadd.f32 %v3014_v63, %v1352_v43  ;;  %v1338_v51 = vld [vmem:[#allocation2 + $0x8] sm:$0xff]  ;;  %v1339_v52 = vld [vmem:[#allocation2 + $0x78] sm:$0xff] }
 0x394   : > { %v1376_v57 = vadd.f32 %v3014_v63, %v1338_v51  ;;  %v1377_v58 = vadd.f32 %v3016_v4, %v1339_v52 }
 0x395   : > { %1446 = vst [vmem:[%s2681_s4 + $0xa0] sm:$0xff] %v1414_v53 }
 0x396   : > { %1447 = vst [vmem:[%s2681_s4 + $0xa8] sm:$0xff] %v1415_v54  ;;  %v1220_v59 = vpop.f32.mrf.mxu0  ;;  %v1285_v60 = vpop.f32.mrf.mxu1 }
 0x397   : > { %v1400_v61 = vadd.f32 %v1368_v55, %v1220_v59  ;;  %v1401_v1 = vadd.f32 %v1369_v56, %v1285_v60  ;;  %v1354_v59 = vld [vmem:[#allocation2 + $0x20] sm:$0xff]  ;;  %v1355_v60 = vld [vmem:[#allocation2 + $0x98] sm:$0xff] }
 0x398   : > { %v1393_v62 = vadd.f32 %v3016_v4, %v1355_v60 }
 0x399   : > { %1432 = vst [vmem:[%s2681_s4 + $0x30] sm:$0xff] %v1400_v61 }
 0x39a   : > { %v1244_v5 = vpop.f32.mrf.mxu2  ;;  %1433 = vst [vmem:[%s2681_s4 + $0x38] sm:$0xff] %v1401_v1  ;;  %v1309_v6 = vpop.f32.mrf.mxu3 }
 0x39b   : > { %v1416_v7 = vadd.f32 %v1384_v0, %v1244_v5  ;;  %v1417_v8 = vadd.f32 %v1385_v2, %v1309_v6  ;;  %v1392_v2 = vadd.f32 %v3014_v63, %v1354_v59 }
 0x39d   : > { %1448 = vst [vmem:[%s2681_s4 + $0xb0] sm:$0xff] %v1416_v7 }
 0x39e   : > { %1449 = vst [vmem:[%s2681_s4 + $0xb8] sm:$0xff] %v1417_v8  ;;  %v1223_v13 = vpop.f32.mrf.mxu0  ;;  %v1288_v14 = vpop.f32.mrf.mxu1 }
 0x39f   : > { %v1402_v15 = vadd.f32 %v1370_v9, %v1223_v13  ;;  %v1403_v16 = vadd.f32 %v1371_v10, %v1288_v14 }
 0x3a1   : > { %1434 = vst [vmem:[%s2681_s4 + $0x40] sm:$0xff] %v1402_v15 }
 0x3a2   : > { %v1247_v21 = vpop.f32.mrf.mxu2  ;;  %1435 = vst [vmem:[%s2681_s4 + $0x48] sm:$0xff] %v1403_v16  ;;  %v1312_v22 = vpop.f32.mrf.mxu3 }
 0x3a3   : > { %v1418_v23 = vadd.f32 %v1386_v18, %v1247_v21  ;;  %v1419_v24 = vadd.f32 %v1387_v19, %v1312_v22 }
 0x3a5   : > { %1450 = vst [vmem:[%s2681_s4 + $0xc0] sm:$0xff] %v1418_v23 }
 0x3a6   : > { %1451 = vst [vmem:[%s2681_s4 + $0xc8] sm:$0xff] %v1419_v24  ;;  %v1226_v29 = vpop.f32.mrf.mxu0  ;;  %v1291_v30 = vpop.f32.mrf.mxu1 }
 0x3a7   : > { %v1404_v31 = vadd.f32 %v1372_v25, %v1226_v29  ;;  %v1405_v33 = vadd.f32 %v1373_v26, %v1291_v30 }
 0x3a9   : > { %1436 = vst [vmem:[%s2681_s4 + $0x50] sm:$0xff] %v1404_v31 }
 0x3aa   : > { %v1250_v37 = vpop.f32.mrf.mxu2  ;;  %1437 = vst [vmem:[%s2681_s4 + $0x58] sm:$0xff] %v1405_v33  ;;  %v1315_v38 = vpop.f32.mrf.mxu3 }
 0x3ab   : > { %v1420_v39 = vadd.f32 %v1388_v32, %v1250_v37  ;;  %v1421_v40 = vadd.f32 %v1389_v34, %v1315_v38 }
 0x3ad   : > { %1452 = vst [vmem:[%s2681_s4 + $0xd0] sm:$0xff] %v1420_v39 }
 0x3ae   : > { %1453 = vst [vmem:[%s2681_s4 + $0xd8] sm:$0xff] %v1421_v40  ;;  %v1229_v45 = vpop.f32.mrf.mxu0  ;;  %v1294_v46 = vpop.f32.mrf.mxu1 }
 0x3af   : > { %v1406_v47 = vadd.f32 %v1374_v41, %v1229_v45  ;;  %v1407_v49 = vadd.f32 %v1375_v42, %v1294_v46 }
 0x3b1   : > { %1438 = vst [vmem:[%s2681_s4 + $0x60] sm:$0xff] %v1406_v47 }
 0x3b2   : > { %v1253_v53 = vpop.f32.mrf.mxu2  ;;  %1439 = vst [vmem:[%s2681_s4 + $0x68] sm:$0xff] %v1407_v49  ;;  %v1318_v54 = vpop.f32.mrf.mxu3 }
 0x3b3   : > { %v1422_v55 = vadd.f32 %v1390_v48, %v1253_v53  ;;  %v1423_v56 = vadd.f32 %v1391_v50, %v1318_v54 }
 0x3b5   : > { %1454 = vst [vmem:[%s2681_s4 + $0xe0] sm:$0xff] %v1422_v55 }
 0x3b6   : > { %1455 = vst [vmem:[%s2681_s4 + $0xe8] sm:$0xff] %v1423_v56  ;;  %v1232_v61 = vpop.f32.mrf.mxu0  ;;  %v1297_v0 = vpop.f32.mrf.mxu1 }
 0x3b7   : > { %v1408_v1 = vadd.f32 %v1376_v57, %v1232_v61  ;;  %v1409_v3 = vadd.f32 %v1377_v58, %v1297_v0 }
 0x3b9   : > { %1440 = vst [vmem:[%s2681_s4 + $0x70] sm:$0xff] %v1408_v1 }
 0x3ba   : > { %v1256_v5 = vpop.f32.mrf.mxu2  ;;  %1441 = vst [vmem:[%s2681_s4 + $0x78] sm:$0xff] %v1409_v3  ;;  %v1321_v6 = vpop.f32.mrf.mxu3 }
 0x3bb   : > { %v1424_v7 = vadd.f32 %v1392_v2, %v1256_v5  ;;  %v1425_v8 = vadd.f32 %v1393_v62, %v1321_v6 }
 0x3bd   : > { %1456 = vst [vmem:[%s2681_s4 + $0xf0] sm:$0xff] %v1424_v7 }
 0x3be   : > { %1457 = vst [vmem:[%s2681_s4 + $0xf8] sm:$0xff] %v1425_v8 }
 0x3bf PF: > { %s3263_s30 = sld [smem:[#allocation29_spill]]  ;;  %s1474_s19 = sshll.u32 %s2681_s4, 4  ;;  %s1475_s19 = int_to_ptr.vmem [resolvable:$true] %s1474_s19 }
 0x3c0   : > { %s3264_s29 = sld [smem:[#allocation30_spill]]  ;;  %s1459_s24 = scalar_lea.sflag [#allocation6], %s407_s6 }
 0x3c1   : > { %s3267_s7 = sld [smem:[#allocation47_spill]] }
 0x3c5   : > { %s1684_s1 = sshll.u32 %s3263_s30, 1 }
 0x3c6   : > { %s1692_s18 = sshll.u32 %s3264_s29, 6 }
 0x3c7   : > { %s1471_s23 = sadd.s32 %s1692_s18, %s1684_s1  ;;  %s3268_s2 = smov %s3267_s7 }
 0x3c8   : > { %s1686_s8 = sshll.u32 %s1471_s23, 3  ;;  %s2129_s16 = scalar_lea.hbm %s3268_s2, 1024 }
 0x3c9   : > { %s1473_s13 = scalar_lea.hbm %s3267_s7, %s1686_s8 }
 0x3ca   : > { %s1476_s0 = sshll.u32 %s1473_s13, 4  ;;  %s1477_s0 = int_to_ptr.hbm [resolvable:$true] %s1476_s0 }
 0x3cb   : > { %s2123_s14 = sshra.s32 %s1477_s0, 4  ;;  %s2124_s14 = int_to_ptr.hbm [resolvable:$true] %s2123_s14 }
 0x3cc   : > { %s2125_s22 = scalar_lea.hbm %s2124_s14, 256  ;;  %p2130_p4 = scmp.lt.s32.totalorder %s2124_s14, %s3268_s2 }
 0x3cd   : > { %p2126_p12 = scmp.ne.s32.totalorder %s2124_s14, %s2125_s22  ;;  %p2131_p6 = scmp.lt.s32.totalorder %s2129_s16, %s2125_s22 }
 0x3cf   : > { %p2127_p13 = pnand %p2126_p12, %p2585_p11  ;;  %p2132_p7 = por %p2131_p6, %p2130_p4 }
 0x3d1   : > { %p2128_p0 = pneg %p2127_p13 }
 0x3d3   : > { %p2133_p2 = pnand %p2132_p7, %p2128_p0 }
 0x3d5   : > { %2136 = shalt.err (!%p2133_p2)
}
 0x3d6   : > { %s2321_s6 = smov 256   ;;  %s2322_s12 = smov 512  }
 0x3d7   : > { %s2323_s20 = smov 16  }
 0x3d8   : > { %1769 = dma.vmem_to_hbm [thread:$0]  (%p2585_p11), %s1475_s19, 4096, %s1477_s0, %s1459_s24, %s2321_s6, %s2322_s12, %s2323_s20  }
 0x3d9 PF: > { %s3269_s26 = sld [smem:[#allocation20_spill]]  ;;  %p1795_p3 = scmp.ge.s32.totalorder %s2311_s11, 2 }
 0x3db   : > { %p1789_p5 = pnand %p1795_p3, %p2593_p1 }
 0x3dd   : > { %p1790_p9 = pneg %p1789_p5 }
 0x3df   : > { %s1491_s29 = sand.u32 1, %s3269_s26  }
 0x3e0   : > { %s1492_s15 = scalar_lea.sflag [#allocation6], %s1491_s29 }
 0x3e1   : > { %2234 = dma.done.wait (%p1790_p9), %s1492_s15, 4096  }
 0x3e2   : > { %2236 = vsyncadd (%p1790_p9), %s1492_s15, 4294963200  ;;  %s25_s11 = sadd.s32 1, %s2311_s11   ;;  %s3272_s18 = sld [smem:[#allocation21_spill]] }
 0x3e3   : > { %p3105_p10 = scmp.ge.s32.totalorder %s25_s11, 10   ;;  %s3273_s19 = sld [smem:[#allocation22_spill]] }
 0x3e4   : > { %s3274_s20 = sld [smem:[#allocation39_spill]]  ;;  %s3287_s24 = smov %s2267_s25 }
 0x3e5   : > { %s3275_s21 = sld [smem:[#allocation24_spill]]  ;;  %s3289_s27 = smov %s2279_s28 }
 0x3e6   : > { %s3276_s22 = sld [smem:[#allocation25_spill]]  ;;  %s3291_s6 = smov %s2303_s9 }
 0x3e7   : > { %s3277_s23 = sld [smem:[#allocation41_spill]] }
 0x3e8   : > { %s3278_s5 = sld [smem:[#allocation26_spill]] }
 0x3e9   : > { %s3279_s26 = sld [smem:[#allocation37_spill]] }
 0x3ea   : > { %s3280_s8 = sld [smem:[#allocation27_spill]] }
 0x3eb   : > { %s3281_s29 = sld [smem:[#allocation38_spill]] }
 0x3ec   : > { %s3282_s30 = sld [smem:[#allocation31_spill]] }
 0x3ed   : > { %s3283_s7 = sld [smem:[#allocation32_spill]] }
 0x3ee   : > { %s3284_s17 = sld [smem:[#allocation33_spill]]  ;;  %s3288_s25 = smov %s3278_s5 }
 0x3ef   : > { %s3285_s13 = sld [smem:[#allocation35_spill]] }
 0x3f0   : > { %s3286_s10 = sld [smem:[#allocation36_spill]]  ;;  %s3290_s28 = smov %s3280_s8 }
 0x3f1   :  { %24 = sbr.rel (!%p3105_p10) target bundleno = 23 (0x17), region = 141 }
 0x3f4   : > { %s3292_s8 = smov %s3284_s17 }
 0x3f5   : > { %s3293_s9 = smov %s3285_s13 }
 0x3f6   :  { %1498 = vsyncpa [#allocation5], 1 }
 0x3f7   :  { %1500 = vsyncpa [#allocation5 + $0x1], 1 }
 0x3f8   :  { %1501 = vsyncpa [#allocation8], 1 }
 0x3f9   :  { %1503 = vsyncpa [#allocation8 + $0x1], 1 }
 0x3fa   :  { %1504 = vsyncpa [#allocation11], 1 }
 0x3fb   :  { %1505 = vsyncpa [#allocation6], 1 }
 0x3fc   :  { %1507 = vsyncpa [#allocation6 + $0x1], 1 }

</bundles_post_ra>
